<compile_context>
chip_gen: v7x
topology: tpu7x:2x2x1
jax: 0.10.0
libtpu: 0.0.40
codegen_flags: <defaults>
</compile_context>

<pallas_src>
import functools

import jax
import jax.numpy as jnp
import numpy as np
from jax.experimental import pallas as pl
from jax.experimental.pallas import tpu as pltpu

NEG_SLOPE = 0.01  # F.leaky_relu default negative slope


def _leaky_relu(x):
    return jnp.where(x > 0, x, NEG_SLOPE * x)


# ----------------------------------------------------------------------------
# Fused kernel: shared 2-layer LSTM -> actor softmax head + q-value head.
# Gate order inside the kernel is (i, f, o, g) (pre-permuted at param-prep).
# ----------------------------------------------------------------------------
def actor_qvalue_kernel(env_ref, act_ref, action_ref,
                        wih1_ref, whh1_ref, b1_ref, w2_ref, b2_ref,
                        wa1_ref, ba1_ref, wa2_ref, ba2_ref, wa3_ref, ba3_ref,
                        wq1h_ref, wq1a_ref, wq1c_ref, bq1_ref,
                        wq2_ref, bq2_ref, wq3_ref, bq3_ref,
                        mu_ref, q_ref, *, hidden, seq_len):
    H = hidden
    T = seq_len
    BT = env_ref.shape[0]          # env is passed flattened as (B*T, I)
    B = BT // T
    A = act_ref.shape[1]

    # ---- shared 2-layer LSTM: last hidden state of layer 2 -------------------
    # Hoisted layer-1 input projection: one well-shaped MXU pass over all T
    # steps with the layer-1 bias folded in.
    g1_all = (jnp.dot(env_ref[...], wih1_ref[...],
                      preferred_element_type=jnp.float32) + b1_ref[...])
    g1_all = g1_all.reshape(B, T, 4 * H)          # lane dim (4H) unchanged

    whh1 = whh1_ref[...]
    w2 = w2_ref[...]                              # (2H, 4H): [W_ih2; W_hh2]
    b2 = jnp.broadcast_to(b2_ref[...], (B, 4 * H))  # broadcast hoisted out of loop

    h1 = jnp.zeros((B, H), jnp.float32)
    c1 = jnp.zeros((B, H), jnp.float32)
    h2 = jnp.zeros((B, H), jnp.float32)
    c2 = jnp.zeros((B, H), jnp.float32)

    # T is static and small -> fully unrolled time loop (same effect as
    # lax.fori_loop(..., unroll=True)) with static per-step slices.
    for t in range(T):
        # layer 1: only the recurrent matmul is left on the serial chain.
        g1 = g1_all[:, t, :] + jnp.dot(h1, whh1, preferred_element_type=jnp.float32)
        s1 = jax.nn.sigmoid(g1[:, :3 * H])        # i, f, o in one EUP launch
        gg1 = jnp.tanh(g1[:, 3 * H:])
        c1 = s1[:, H:2 * H] * c1 + s1[:, :H] * gg1
        h1 = s1[:, 2 * H:] * jnp.tanh(c1)

        # layer 2: single fused matmul over [h1 | h2_prev].
        g2 = jnp.dot(jnp.concatenate([h1, h2], axis=1), w2,
                     preferred_element_type=jnp.float32) + b2
        s2 = jax.nn.sigmoid(g2[:, :3 * H])
        gg2 = jnp.tanh(g2[:, 3 * H:])
        c2 = s2[:, H:2 * H] * c2 + s2[:, :H] * gg2
        h2 = s2[:, 2 * H:] * jnp.tanh(c2)

    h = h2  # == lstm_out[:, -1, :]

    # ---- actor head: tanh & sigmoid branches packed into one matmul chain ----
    u = _leaky_relu(jnp.dot(h, wa1_ref[...], preferred_element_type=jnp.float32)
                    + ba1_ref[...])                              # (B, 128)
    u = _leaky_relu(jnp.dot(u, wa2_ref[...], preferred_element_type=jnp.float32)
                    + ba2_ref[...])                              # (B, 32) block-diag
    z = jnp.dot(u, wa3_ref[...], preferred_element_type=jnp.float32) + ba3_ref[...]
    tan_mu = jnp.tanh(z[:, :A])
    sig_mu = jax.nn.sigmoid(z[:, A:])
    mix = tan_mu * (1.0 - sig_mu) + sig_mu * act_ref[...]
    m = jnp.max(mix, axis=1, keepdims=True)
    e = jnp.exp(mix - m)
    mu_ref[...] = e * pl.reciprocal(jnp.sum(e, axis=1, keepdims=True), approx=True)

    # ---- q-value head: concat-free (three matmul-accumulates into one buffer) -
    q = (jnp.dot(h, wq1h_ref[...], preferred_element_type=jnp.float32)
         + jnp.dot(act_ref[...], wq1a_ref[...], preferred_element_type=jnp.float32)
         + jnp.dot(action_ref[...], wq1c_ref[...], preferred_element_type=jnp.float32)
         + bq1_ref[...])
    q = _leaky_relu(q)
    q = _leaky_relu(jnp.dot(q, wq2_ref[...], preferred_element_type=jnp.float32)
                    + bq2_ref[...])
    q_ref[...] = jnp.dot(q, wq3_ref[...], preferred_element_type=jnp.float32) + bq3_ref[...]


# ----------------------------------------------------------------------------
# Parameter init (raw, PyTorch-equivalent layout) and packing to kernel layout.
# ----------------------------------------------------------------------------
def init_params(key, input_size, hidden_size, action_size):
    """Raw params: weights already transposed to (in, out); LSTM gates in
    PyTorch (i,f,g,o) order with separate b_ih / b_hh. Used by the reference."""
    keys = iter(jax.random.split(key, 32))

    def u(shape, k):
        return jax.random.uniform(next(keys), shape, jnp.float32, -k, k)

    H, I, A = hidden_size, input_size, action_size
    kH = 1.0 / np.sqrt(H)
    raw = dict(hidden=H, action=A, input=I)
    raw["w_ih0"] = u((4 * H, I), kH).T
    raw["w_hh0"] = u((4 * H, H), kH).T
    raw["b_ih0"] = u((4 * H,), kH).reshape(1, -1)
    raw["b_hh0"] = u((4 * H,), kH).reshape(1, -1)
    raw["w_ih1"] = u((4 * H, H), kH).T
    raw["w_hh1"] = u((4 * H, H), kH).T
    raw["b_ih1"] = u((4 * H,), kH).reshape(1, -1)
    raw["b_hh1"] = u((4 * H,), kH).reshape(1, -1)

    def linear(in_f, out_f):
        k = 1.0 / np.sqrt(in_f)
        return u((out_f, in_f), k).T, u((out_f,), k).reshape(1, out_f)

    raw["wt1"], raw["bt1"] = linear(H, 64)
    raw["wt2"], raw["bt2"] = linear(64, 16)
    raw["wt3"], raw["bt3"] = linear(16, A)
    raw["ws1"], raw["bs1"] = linear(H, 64)
    raw["ws2"], raw["bs2"] = linear(64, 16)
    raw["ws3"], raw["bs3"] = linear(16, A)
    raw["wq1"], raw["bq1"] = linear(H + 2 * A, 64)
    raw["wq2"], raw["bq2"] = linear(64, 8)
    raw["wq3"], raw["bq3"] = linear(8, 1)
    return raw


def pack_params(raw):
    """Kernel layout: gate columns permuted (i,f,g,o)->(i,f,o,g), summed LSTM
    biases, fused layer-2 weight, packed / block-diagonal actor head, split wq1."""
    H, A = raw["hidden"], raw["action"]

    def perm(w):  # (..., 4H) columns i,f,g,o -> i,f,o,g
        i, f, g, o = jnp.split(w, 4, axis=-1)
        return jnp.concatenate([i, f, o, g], axis=-1)

    def block_diag(a, b):
        z01 = jnp.zeros((a.shape[0], b.shape[1]), jnp.float32)
        z10 = jnp.zeros((b.shape[0], a.shape[1]), jnp.float32)
        return jnp.concatenate(
            [jnp.concatenate([a, z01], axis=1),
             jnp.concatenate([z10, b], axis=1)], axis=0)

    p = dict(hidden=H, action=A)
    p["wih1"] = perm(raw["w_ih0"])                       # (I, 4H)
    p["whh1"] = perm(raw["w_hh0"])                       # (H, 4H)
    p["b1"] = perm(raw["b_ih0"] + raw["b_hh0"])          # (1, 4H)
    p["w2"] = jnp.concatenate([perm(raw["w_ih1"]), perm(raw["w_hh1"])], axis=0)  # (2H, 4H)
    p["b2"] = perm(raw["b_ih1"] + raw["b_hh1"])          # (1, 4H)
    # actor head packed: layer1 concat, layers 2/3 block-diagonal (tan | sig).
    p["wa1"] = jnp.concatenate([raw["wt1"], raw["ws1"]], axis=1)   # (H, 128)
    p["ba1"] = jnp.concatenate([raw["bt1"], raw["bs1"]], axis=1)   # (1, 128)
    p["wa2"] = block_diag(raw["wt2"], raw["ws2"])                  # (128, 32)
    p["ba2"] = jnp.concatenate([raw["bt2"], raw["bs2"]], axis=1)   # (1, 32)
    p["wa3"] = block_diag(raw["wt3"], raw["ws3"])                  # (32, 2A)
    p["ba3"] = jnp.concatenate([raw["bt3"], raw["bs3"]], axis=1)   # (1, 2A)
    # q-value head: split wq1 row-blocks to avoid the in-kernel concat.
    p["wq1h"] = raw["wq1"][:H]
    p["wq1a"] = raw["wq1"][H:H + A]
    p["wq1c"] = raw["wq1"][H + A:]
    p["bq1"] = raw["bq1"]
    p["wq2"], p["bq2"] = raw["wq2"], raw["bq2"]
    p["wq3"], p["bq3"] = raw["wq3"], raw["bq3"]
    return p


# ----------------------------------------------------------------------------
# Wrappers. The fused call returns (mu, q); the per-type wrappers mirror the
# PyTorch forward(type=...) and simply select the relevant output (the unused
# head is a handful of tiny matmuls, negligible next to the shared LSTM).
# ----------------------------------------------------------------------------
def _vmem_spec():
    return pl.BlockSpec(memory_space=pltpu.MemorySpace.VMEM)


def actor_qvalue_forward(params, env_state, action_state, action):
    B, T, I = env_state.shape
    A = params["action"]
    env2d = env_state.astype(jnp.float32).reshape(B * T, I)  # free reshape, no transpose
    args = (env2d, action_state.astype(jnp.float32), action.astype(jnp.float32),
            params["wih1"], params["whh1"], params["b1"], params["w2"], params["b2"],
            params["wa1"], params["ba1"], params["wa2"], params["ba2"],
            params["wa3"], params["ba3"],
            params["wq1h"], params["wq1a"], params["wq1c"], params["bq1"],
            params["wq2"], params["bq2"], params["wq3"], params["bq3"])
    mu, q = pl.pallas_call(
        functools.partial(actor_qvalue_kernel, hidden=params["hidden"], seq_len=T),
        out_shape=(jax.ShapeDtypeStruct((B, A), jnp.float32),
                   jax.ShapeDtypeStruct((B, 1), jnp.float32)),
        in_specs=[_vmem_spec() for _ in args],
        out_specs=(_vmem_spec(), _vmem_spec()),
    )(*args)
    return mu, q


def actor_forward(params, env_state, action_state):
    """forward(env_state, action_state, type='actor') -> (B, action_size) softmax."""
    B = env_state.shape[0]
    zeros_action = jnp.zeros((B, params["action"]), jnp.float32)
    mu, _ = actor_qvalue_forward(params, env_state, action_state, zeros_action)
    return mu


def qvalue_forward(params, env_state, action_state, action):
    """forward(env_state, action_state, action, type='qvalue') -> (B, 1)."""
    _, q = actor_qvalue_forward(params, env_state, action_state, action)
    return q


# ----------------------------------------------------------------------------
# Pure-JAX reference using the RAW (PyTorch-layout) params, so the test also
# validates the gate permutation / weight packing done in pack_params.
# ----------------------------------------------------------------------------
def _ref_lstm_last(raw, env):
    B, T, _ = env.shape
    H = raw["hidden"]
    h1 = c1 = h2 = c2 = jnp.zeros((B, H), jnp.float32)
    b1 = raw["b_ih0"] + raw["b_hh0"]
    b2 = raw["b_ih1"] + raw["b_hh1"]
    for t in range(T):
        x = env[:, t, :]
        g1 = x @ raw["w_ih0"] + h1 @ raw["w_hh0"] + b1
        i1, f1 = jax.nn.sigmoid(g1[:, :H]), jax.nn.sigmoid(g1[:, H:2 * H])
        gg1, o1 = jnp.tanh(g1[:, 2 * H:3 * H]), jax.nn.sigmoid(g1[:, 3 * H:])
        c1 = f1 * c1 + i1 * gg1
        h1 = o1 * jnp.tanh(c1)
        g2 = h1 @ raw["w_ih1"] + h2 @ raw["w_hh1"] + b2
        i2, f2 = jax.nn.sigmoid(g2[:, :H]), jax.nn.sigmoid(g2[:, H:2 * H])
        gg2, o2 = jnp.tanh(g2[:, 2 * H:3 * H]), jax.nn.sigmoid(g2[:, 3 * H:])
        c2 = f2 * c2 + i2 * gg2
        h2 = o2 * jnp.tanh(c2)
    return h2


def actor_reference(raw, env_state, action_state):
    h = _ref_lstm_last(raw, env_state)
    t = _leaky_relu(h @ raw["wt1"] + raw["bt1"])
    t = _leaky_relu(t @ raw["wt2"] + raw["bt2"])
    t = jnp.tanh(t @ raw["wt3"] + raw["bt3"])
    s = _leaky_relu(h @ raw["ws1"] + raw["bs1"])
    s = _leaky_relu(s @ raw["ws2"] + raw["bs2"])
    s = jax.nn.sigmoid(s @ raw["ws3"] + raw["bs3"])
    mix = t * (1.0 - s) + s * action_state
    return jax.nn.softmax(mix, axis=1)


def qvalue_reference(raw, env_state, action_state, action):
    h = _ref_lstm_last(raw, env_state)
    cat = jnp.concatenate([h, action_state, action], axis=1)
    q = _leaky_relu(cat @ raw["wq1"] + raw["bq1"])
    q = _leaky_relu(q @ raw["wq2"] + raw["bq2"])
    return q @ raw["wq3"] + raw["bq3"]


if __name__ == "__main__":
    B, T, I, H, A = 2, 8, 10, 32, 4  # batch, seq, input_size, hidden_size, action_size

    root = jax.random.PRNGKey(0)
    k_env, k_act, k_action, k_params = jax.random.split(root, 4)
    env_state = jax.random.normal(k_env, (B, T, I), jnp.float32)
    action_state = jax.nn.softmax(jax.random.normal(k_act, (B, A), jnp.float32), axis=1)
    action = jax.nn.softmax(jax.random.normal(k_action, (B, A), jnp.float32), axis=1)

    raw = init_params(k_params, I, H, A)
    params = pack_params(raw)

    # Fused call (both heads share the LSTM) + the per-type wrappers.
    mu, q = actor_qvalue_forward(params, env_state, action_state, action)
    mu = jax.block_until_ready(mu)
    q = jax.block_until_ready(q)
    mu_a = jax.block_until_ready(actor_forward(params, env_state, action_state))
    q_a = jax.block_until_ready(qvalue_forward(params, env_state, action_state, action))

    mu_ref = actor_reference(raw, env_state, action_state)
    q_ref = qvalue_reference(raw, env_state, action_state, action)

    assert mu.shape == (B, A) and q.shape == (B, 1)
    np.testing.assert_allclose(np.asarray(mu), np.asarray(mu_ref), rtol=2e-2, atol=1e-2)
    np.testing.assert_allclose(np.asarray(q), np.asarray(q_ref), rtol=2e-2, atol=1e-2)
    np.testing.assert_allclose(np.asarray(mu_a), np.asarray(mu_ref), rtol=2e-2, atol=1e-2)
    np.testing.assert_allclose(np.asarray(q_a), np.asarray(q_ref), rtol=2e-2, atol=1e-2)

    print("KERNEL_OK")
</pallas_src>

<mosaic_0001>
module attributes {stable_mosaic.version = 11 : i64} {
  func.func @actor_qvalue_kernel(%arg0: memref<16x10xf32, #tpu.memory_space<vmem>>, %arg1: memref<2x4xf32, #tpu.memory_space<vmem>>, %arg2: memref<2x4xf32, #tpu.memory_space<vmem>>, %arg3: memref<10x128xf32, #tpu.memory_space<vmem>>, %arg4: memref<32x128xf32, #tpu.memory_space<vmem>>, %arg5: memref<1x128xf32, #tpu.memory_space<vmem>>, %arg6: memref<64x128xf32, #tpu.memory_space<vmem>>, %arg7: memref<1x128xf32, #tpu.memory_space<vmem>>, %arg8: memref<32x128xf32, #tpu.memory_space<vmem>>, %arg9: memref<1x128xf32, #tpu.memory_space<vmem>>, %arg10: memref<128x32xf32, #tpu.memory_space<vmem>>, %arg11: memref<1x32xf32, #tpu.memory_space<vmem>>, %arg12: memref<32x8xf32, #tpu.memory_space<vmem>>, %arg13: memref<1x8xf32, #tpu.memory_space<vmem>>, %arg14: memref<32x64xf32, #tpu.memory_space<vmem>>, %arg15: memref<4x64xf32, #tpu.memory_space<vmem>>, %arg16: memref<4x64xf32, #tpu.memory_space<vmem>>, %arg17: memref<1x64xf32, #tpu.memory_space<vmem>>, %arg18: memref<64x8xf32, #tpu.memory_space<vmem>>, %arg19: memref<1x8xf32, #tpu.memory_space<vmem>>, %arg20: memref<8x1xf32, #tpu.memory_space<vmem>>, %arg21: memref<1x1xf32, #tpu.memory_space<vmem>>, %arg22: memref<2x4xf32, #tpu.memory_space<vmem>>, %arg23: memref<2x1xf32, #tpu.memory_space<vmem>>) attributes {dimension_semantics = [], scalar_prefetch = 0 : i64, scratch_operands = 0 : i64, tpu.core_type = #tpu.core_type<tc>} {
    %c0 = arith.constant 0 : index
    %c0_0 = arith.constant 0 : index
    %0 = vector.load %arg0[%c0, %c0_0] : memref<16x10xf32, #tpu.memory_space<vmem>>, vector<16x10xf32>
    %c0_1 = arith.constant 0 : index
    %c0_2 = arith.constant 0 : index
    %1 = vector.load %arg3[%c0_1, %c0_2] : memref<10x128xf32, #tpu.memory_space<vmem>>, vector<10x128xf32>
    %cst = arith.constant dense<0.000000e+00> : vector<16x128xf32>
    %2 = tpu.matmul %0, %1, %cst {dimension_numbers = #tpu.dot_dimension_numbers<[1], [0], [0], [1], [0, 0, 1, 1], [], []>} : vector<16x10xf32>, vector<10x128xf32>, vector<16x128xf32> -> vector<16x128xf32>
    %c0_3 = arith.constant 0 : index
    %c0_4 = arith.constant 0 : index
    %3 = vector.load %arg5[%c0_3, %c0_4] : memref<1x128xf32, #tpu.memory_space<vmem>>, vector<1x128xf32>
    %4 = vector.broadcast %3 : vector<1x128xf32> to vector<16x128xf32>
    %5 = arith.addf %2, %4 : vector<16x128xf32>
    %6 = vector.shape_cast %5 : vector<16x128xf32> to vector<2x8x128xf32>
    %c0_5 = arith.constant 0 : index
    %c0_6 = arith.constant 0 : index
    %7 = vector.load %arg4[%c0_5, %c0_6] : memref<32x128xf32, #tpu.memory_space<vmem>>, vector<32x128xf32>
    %c0_7 = arith.constant 0 : index
    %c0_8 = arith.constant 0 : index
    %8 = vector.load %arg6[%c0_7, %c0_8] : memref<64x128xf32, #tpu.memory_space<vmem>>, vector<64x128xf32>
    %c0_9 = arith.constant 0 : index
    %c0_10 = arith.constant 0 : index
    %9 = vector.load %arg7[%c0_9, %c0_10] : memref<1x128xf32, #tpu.memory_space<vmem>>, vector<1x128xf32>
    %10 = vector.shape_cast %9 : vector<1x128xf32> to vector<1x128xf32>
    %11 = vector.broadcast %10 : vector<1x128xf32> to vector<2x128xf32>
    %cst_11 = arith.constant 0.000000e+00 : f32
    %12 = vector.broadcast %cst_11 : f32 to vector<2x32xf32>
    %cst_12 = arith.constant 0.000000e+00 : f32
    %13 = vector.broadcast %cst_12 : f32 to vector<2x32xf32>
    %cst_13 = arith.constant 0.000000e+00 : f32
    %14 = vector.broadcast %cst_13 : f32 to vector<2x32xf32>
    %cst_14 = arith.constant 0.000000e+00 : f32
    %15 = vector.broadcast %cst_14 : f32 to vector<2x32xf32>
    %16 = vector.extract_strided_slice %6 {offsets = [0, 0, 0], sizes = [2, 1, 128], strides = [1, 1, 1]} : vector<2x8x128xf32> to vector<2x1x128xf32>
    %17 = vector.shape_cast %16 : vector<2x1x128xf32> to vector<2x128xf32>
    %cst_15 = arith.constant dense<0.000000e+00> : vector<2x128xf32>
    %18 = tpu.matmul %12, %7, %cst_15 {dimension_numbers = #tpu.dot_dimension_numbers<[1], [0], [0], [1], [0, 0, 1, 1], [], []>} : vector<2x32xf32>, vector<32x128xf32>, vector<2x128xf32> -> vector<2x128xf32>
    %19 = arith.addf %17, %18 : vector<2x128xf32>
    %20 = vector.extract_strided_slice %19 {offsets = [0, 0], sizes = [2, 96], strides = [1, 1]} : vector<2x128xf32> to vector<2x96xf32>
    %21 = arith.negf %20 : vector<2x96xf32>
    %22 = math.exp %21 : vector<2x96xf32>
    %cst_16 = arith.constant 1.000000e+00 : f32
    %23 = vector.broadcast %cst_16 : f32 to vector<2x96xf32>
    %24 = arith.addf %23, %22 : vector<2x96xf32>
    %25 = arith.divf %23, %24 : vector<2x96xf32>
    %26 = vector.extract_strided_slice %19 {offsets = [0, 96], sizes = [2, 32], strides = [1, 1]} : vector<2x128xf32> to vector<2x32xf32>
    %27 = math.tanh %26 : vector<2x32xf32>
    %28 = vector.extract_strided_slice %25 {offsets = [0, 32], sizes = [2, 32], strides = [1, 1]} : vector<2x96xf32> to vector<2x32xf32>
    %29 = arith.mulf %28, %13 : vector<2x32xf32>
    %30 = vector.extract_strided_slice %25 {offsets = [0, 0], sizes = [2, 32], strides = [1, 1]} : vector<2x96xf32> to vector<2x32xf32>
    %31 = arith.mulf %30, %27 : vector<2x32xf32>
    %32 = arith.addf %29, %31 : vector<2x32xf32>
    %33 = vector.extract_strided_slice %25 {offsets = [0, 64], sizes = [2, 32], strides = [1, 1]} : vector<2x96xf32> to vector<2x32xf32>
    %34 = math.tanh %32 : vector<2x32xf32>
    %35 = arith.mulf %33, %34 : vector<2x32xf32>
    %36 = tpu.concatenate %35, %14 in 1 : vector<2x32xf32>, vector<2x32xf32> -> vector<2x64xf32>
    %cst_17 = arith.constant dense<0.000000e+00> : vector<2x128xf32>
    %37 = tpu.matmul %36, %8, %cst_17 {dimension_numbers = #tpu.dot_dimension_numbers<[1], [0], [0], [1], [0, 0, 1, 1], [], []>} : vector<2x64xf32>, vector<64x128xf32>, vector<2x128xf32> -> vector<2x128xf32>
    %38 = arith.addf %37, %11 : vector<2x128xf32>
    %39 = vector.extract_strided_slice %38 {offsets = [0, 0], sizes = [2, 96], strides = [1, 1]} : vector<2x128xf32> to vector<2x96xf32>
    %40 = arith.negf %39 : vector<2x96xf32>
    %41 = math.exp %40 : vector<2x96xf32>
    %cst_18 = arith.constant 1.000000e+00 : f32
    %42 = vector.broadcast %cst_18 : f32 to vector<2x96xf32>
    %43 = arith.addf %42, %41 : vector<2x96xf32>
    %44 = arith.divf %42, %43 : vector<2x96xf32>
    %45 = vector.extract_strided_slice %38 {offsets = [0, 96], sizes = [2, 32], strides = [1, 1]} : vector<2x128xf32> to vector<2x32xf32>
    %46 = math.tanh %45 : vector<2x32xf32>
    %47 = vector.extract_strided_slice %44 {offsets = [0, 32], sizes = [2, 32], strides = [1, 1]} : vector<2x96xf32> to vector<2x32xf32>
    %48 = arith.mulf %47, %15 : vector<2x32xf32>
    %49 = vector.extract_strided_slice %44 {offsets = [0, 0], sizes = [2, 32], strides = [1, 1]} : vector<2x96xf32> to vector<2x32xf32>
    %50 = arith.mulf %49, %46 : vector<2x32xf32>
    %51 = arith.addf %48, %50 : vector<2x32xf32>
    %52 = vector.extract_strided_slice %44 {offsets = [0, 64], sizes = [2, 32], strides = [1, 1]} : vector<2x96xf32> to vector<2x32xf32>
    %53 = math.tanh %51 : vector<2x32xf32>
    %54 = arith.mulf %52, %53 : vector<2x32xf32>
    %55 = vector.extract_strided_slice %6 {offsets = [0, 1, 0], sizes = [2, 1, 128], strides = [1, 1, 1]} : vector<2x8x128xf32> to vector<2x1x128xf32>
    %56 = vector.shape_cast %55 : vector<2x1x128xf32> to vector<2x128xf32>
    %cst_19 = arith.constant dense<0.000000e+00> : vector<2x128xf32>
    %57 = tpu.matmul %35, %7, %cst_19 {dimension_numbers = #tpu.dot_dimension_numbers<[1], [0], [0], [1], [0, 0, 1, 1], [], []>} : vector<2x32xf32>, vector<32x128xf32>, vector<2x128xf32> -> vector<2x128xf32>
    %58 = arith.addf %56, %57 : vector<2x128xf32>
    %59 = vector.extract_strided_slice %58 {offsets = [0, 0], sizes = [2, 96], strides = [1, 1]} : vector<2x128xf32> to vector<2x96xf32>
    %60 = arith.negf %59 : vector<2x96xf32>
    %61 = math.exp %60 : vector<2x96xf32>
    %cst_20 = arith.constant 1.000000e+00 : f32
    %62 = vector.broadcast %cst_20 : f32 to vector<2x96xf32>
    %63 = arith.addf %62, %61 : vector<2x96xf32>
    %64 = arith.divf %62, %63 : vector<2x96xf32>
    %65 = vector.extract_strided_slice %58 {offsets = [0, 96], sizes = [2, 32], strides = [1, 1]} : vector<2x128xf32> to vector<2x32xf32>
    %66 = math.tanh %65 : vector<2x32xf32>
    %67 = vector.extract_strided_slice %64 {offsets = [0, 32], sizes = [2, 32], strides = [1, 1]} : vector<2x96xf32> to vector<2x32xf32>
    %68 = arith.mulf %67, %32 : vector<2x32xf32>
    %69 = vector.extract_strided_slice %64 {offsets = [0, 0], sizes = [2, 32], strides = [1, 1]} : vector<2x96xf32> to vector<2x32xf32>
    %70 = arith.mulf %69, %66 : vector<2x32xf32>
    %71 = arith.addf %68, %70 : vector<2x32xf32>
    %72 = vector.extract_strided_slice %64 {offsets = [0, 64], sizes = [2, 32], strides = [1, 1]} : vector<2x96xf32> to vector<2x32xf32>
    %73 = math.tanh %71 : vector<2x32xf32>
    %74 = arith.mulf %72, %73 : vector<2x32xf32>
    %75 = tpu.concatenate %74, %54 in 1 : vector<2x32xf32>, vector<2x32xf32> -> vector<2x64xf32>
    %cst_21 = arith.constant dense<0.000000e+00> : vector<2x128xf32>
    %76 = tpu.matmul %75, %8, %cst_21 {dimension_numbers = #tpu.dot_dimension_numbers<[1], [0], [0], [1], [0, 0, 1, 1], [], []>} : vector<2x64xf32>, vector<64x128xf32>, vector<2x128xf32> -> vector<2x128xf32>
    %77 = arith.addf %76, %11 : vector<2x128xf32>
    %78 = vector.extract_strided_slice %77 {offsets = [0, 0], sizes = [2, 96], strides = [1, 1]} : vector<2x128xf32> to vector<2x96xf32>
    %79 = arith.negf %78 : vector<2x96xf32>
    %80 = math.exp %79 : vector<2x96xf32>
    %cst_22 = arith.constant 1.000000e+00 : f32
    %81 = vector.broadcast %cst_22 : f32 to vector<2x96xf32>
    %82 = arith.addf %81, %80 : vector<2x96xf32>
    %83 = arith.divf %81, %82 : vector<2x96xf32>
    %84 = vector.extract_strided_slice %77 {offsets = [0, 96], sizes = [2, 32], strides = [1, 1]} : vector<2x128xf32> to vector<2x32xf32>
    %85 = math.tanh %84 : vector<2x32xf32>
    %86 = vector.extract_strided_slice %83 {offsets = [0, 32], sizes = [2, 32], strides = [1, 1]} : vector<2x96xf32> to vector<2x32xf32>
    %87 = arith.mulf %86, %51 : vector<2x32xf32>
    %88 = vector.extract_strided_slice %83 {offsets = [0, 0], sizes = [2, 32], strides = [1, 1]} : vector<2x96xf32> to vector<2x32xf32>
    %89 = arith.mulf %88, %85 : vector<2x32xf32>
    %90 = arith.addf %87, %89 : vector<2x32xf32>
    %91 = vector.extract_strided_slice %83 {offsets = [0, 64], sizes = [2, 32], strides = [1, 1]} : vector<2x96xf32> to vector<2x32xf32>
    %92 = math.tanh %90 : vector<2x32xf32>
    %93 = arith.mulf %91, %92 : vector<2x32xf32>
    %94 = vector.extract_strided_slice %6 {offsets = [0, 2, 0], sizes = [2, 1, 128], strides = [1, 1, 1]} : vector<2x8x128xf32> to vector<2x1x128xf32>
    %95 = vector.shape_cast %94 : vector<2x1x128xf32> to vector<2x128xf32>
    %cst_23 = arith.constant dense<0.000000e+00> : vector<2x128xf32>
    %96 = tpu.matmul %74, %7, %cst_23 {dimension_numbers = #tpu.dot_dimension_numbers<[1], [0], [0], [1], [0, 0, 1, 1], [], []>} : vector<2x32xf32>, vector<32x128xf32>, vector<2x128xf32> -> vector<2x128xf32>
    %97 = arith.addf %95, %96 : vector<2x128xf32>
    %98 = vector.extract_strided_slice %97 {offsets = [0, 0], sizes = [2, 96], strides = [1, 1]} : vector<2x128xf32> to vector<2x96xf32>
    %99 = arith.negf %98 : vector<2x96xf32>
    %100 = math.exp %99 : vector<2x96xf32>
    %cst_24 = arith.constant 1.000000e+00 : f32
    %101 = vector.broadcast %cst_24 : f32 to vector<2x96xf32>
    %102 = arith.addf %101, %100 : vector<2x96xf32>
    %103 = arith.divf %101, %102 : vector<2x96xf32>
    %104 = vector.extract_strided_slice %97 {offsets = [0, 96], sizes = [2, 32], strides = [1, 1]} : vector<2x128xf32> to vector<2x32xf32>
    %105 = math.tanh %104 : vector<2x32xf32>
    %106 = vector.extract_strided_slice %103 {offsets = [0, 32], sizes = [2, 32], strides = [1, 1]} : vector<2x96xf32> to vector<2x32xf32>
    %107 = arith.mulf %106, %71 : vector<2x32xf32>
    %108 = vector.extract_strided_slice %103 {offsets = [0, 0], sizes = [2, 32], strides = [1, 1]} : vector<2x96xf32> to vector<2x32xf32>
    %109 = arith.mulf %108, %105 : vector<2x32xf32>
    %110 = arith.addf %107, %109 : vector<2x32xf32>
    %111 = vector.extract_strided_slice %103 {offsets = [0, 64], sizes = [2, 32], strides = [1, 1]} : vector<2x96xf32> to vector<2x32xf32>
    %112 = math.tanh %110 : vector<2x32xf32>
    %113 = arith.mulf %111, %112 : vector<2x32xf32>
    %114 = tpu.concatenate %113, %93 in 1 : vector<2x32xf32>, vector<2x32xf32> -> vector<2x64xf32>
    %cst_25 = arith.constant dense<0.000000e+00> : vector<2x128xf32>
    %115 = tpu.matmul %114, %8, %cst_25 {dimension_numbers = #tpu.dot_dimension_numbers<[1], [0], [0], [1], [0, 0, 1, 1], [], []>} : vector<2x64xf32>, vector<64x128xf32>, vector<2x128xf32> -> vector<2x128xf32>
    %116 = arith.addf %115, %11 : vector<2x128xf32>
    %117 = vector.extract_strided_slice %116 {offsets = [0, 0], sizes = [2, 96], strides = [1, 1]} : vector<2x128xf32> to vector<2x96xf32>
    %118 = arith.negf %117 : vector<2x96xf32>
    %119 = math.exp %118 : vector<2x96xf32>
    %cst_26 = arith.constant 1.000000e+00 : f32
    %120 = vector.broadcast %cst_26 : f32 to vector<2x96xf32>
    %121 = arith.addf %120, %119 : vector<2x96xf32>
    %122 = arith.divf %120, %121 : vector<2x96xf32>
    %123 = vector.extract_strided_slice %116 {offsets = [0, 96], sizes = [2, 32], strides = [1, 1]} : vector<2x128xf32> to vector<2x32xf32>
    %124 = math.tanh %123 : vector<2x32xf32>
    %125 = vector.extract_strided_slice %122 {offsets = [0, 32], sizes = [2, 32], strides = [1, 1]} : vector<2x96xf32> to vector<2x32xf32>
    %126 = arith.mulf %125, %90 : vector<2x32xf32>
    %127 = vector.extract_strided_slice %122 {offsets = [0, 0], sizes = [2, 32], strides = [1, 1]} : vector<2x96xf32> to vector<2x32xf32>
    %128 = arith.mulf %127, %124 : vector<2x32xf32>
    %129 = arith.addf %126, %128 : vector<2x32xf32>
    %130 = vector.extract_strided_slice %122 {offsets = [0, 64], sizes = [2, 32], strides = [1, 1]} : vector<2x96xf32> to vector<2x32xf32>
    %131 = math.tanh %129 : vector<2x32xf32>
    %132 = arith.mulf %130, %131 : vector<2x32xf32>
    %133 = vector.extract_strided_slice %6 {offsets = [0, 3, 0], sizes = [2, 1, 128], strides = [1, 1, 1]} : vector<2x8x128xf32> to vector<2x1x128xf32>
    %134 = vector.shape_cast %133 : vector<2x1x128xf32> to vector<2x128xf32>
    %cst_27 = arith.constant dense<0.000000e+00> : vector<2x128xf32>
    %135 = tpu.matmul %113, %7, %cst_27 {dimension_numbers = #tpu.dot_dimension_numbers<[1], [0], [0], [1], [0, 0, 1, 1], [], []>} : vector<2x32xf32>, vector<32x128xf32>, vector<2x128xf32> -> vector<2x128xf32>
    %136 = arith.addf %134, %135 : vector<2x128xf32>
    %137 = vector.extract_strided_slice %136 {offsets = [0, 0], sizes = [2, 96], strides = [1, 1]} : vector<2x128xf32> to vector<2x96xf32>
    %138 = arith.negf %137 : vector<2x96xf32>
    %139 = math.exp %138 : vector<2x96xf32>
    %cst_28 = arith.constant 1.000000e+00 : f32
    %140 = vector.broadcast %cst_28 : f32 to vector<2x96xf32>
    %141 = arith.addf %140, %139 : vector<2x96xf32>
    %142 = arith.divf %140, %141 : vector<2x96xf32>
    %143 = vector.extract_strided_slice %136 {offsets = [0, 96], sizes = [2, 32], strides = [1, 1]} : vector<2x128xf32> to vector<2x32xf32>
    %144 = math.tanh %143 : vector<2x32xf32>
    %145 = vector.extract_strided_slice %142 {offsets = [0, 32], sizes = [2, 32], strides = [1, 1]} : vector<2x96xf32> to vector<2x32xf32>
    %146 = arith.mulf %145, %110 : vector<2x32xf32>
    %147 = vector.extract_strided_slice %142 {offsets = [0, 0], sizes = [2, 32], strides = [1, 1]} : vector<2x96xf32> to vector<2x32xf32>
    %148 = arith.mulf %147, %144 : vector<2x32xf32>
    %149 = arith.addf %146, %148 : vector<2x32xf32>
    %150 = vector.extract_strided_slice %142 {offsets = [0, 64], sizes = [2, 32], strides = [1, 1]} : vector<2x96xf32> to vector<2x32xf32>
    %151 = math.tanh %149 : vector<2x32xf32>
    %152 = arith.mulf %150, %151 : vector<2x32xf32>
    %153 = tpu.concatenate %152, %132 in 1 : vector<2x32xf32>, vector<2x32xf32> -> vector<2x64xf32>
    %cst_29 = arith.constant dense<0.000000e+00> : vector<2x128xf32>
    %154 = tpu.matmul %153, %8, %cst_29 {dimension_numbers = #tpu.dot_dimension_numbers<[1], [0], [0], [1], [0, 0, 1, 1], [], []>} : vector<2x64xf32>, vector<64x128xf32>, vector<2x128xf32> -> vector<2x128xf32>
    %155 = arith.addf %154, %11 : vector<2x128xf32>
    %156 = vector.extract_strided_slice %155 {offsets = [0, 0], sizes = [2, 96], strides = [1, 1]} : vector<2x128xf32> to vector<2x96xf32>
    %157 = arith.negf %156 : vector<2x96xf32>
    %158 = math.exp %157 : vector<2x96xf32>
    %cst_30 = arith.constant 1.000000e+00 : f32
    %159 = vector.broadcast %cst_30 : f32 to vector<2x96xf32>
    %160 = arith.addf %159, %158 : vector<2x96xf32>
    %161 = arith.divf %159, %160 : vector<2x96xf32>
    %162 = vector.extract_strided_slice %155 {offsets = [0, 96], sizes = [2, 32], strides = [1, 1]} : vector<2x128xf32> to vector<2x32xf32>
    %163 = math.tanh %162 : vector<2x32xf32>
    %164 = vector.extract_strided_slice %161 {offsets = [0, 32], sizes = [2, 32], strides = [1, 1]} : vector<2x96xf32> to vector<2x32xf32>
    %165 = arith.mulf %164, %129 : vector<2x32xf32>
    %166 = vector.extract_strided_slice %161 {offsets = [0, 0], sizes = [2, 32], strides = [1, 1]} : vector<2x96xf32> to vector<2x32xf32>
    %167 = arith.mulf %166, %163 : vector<2x32xf32>
    %168 = arith.addf %165, %167 : vector<2x32xf32>
    %169 = vector.extract_strided_slice %161 {offsets = [0, 64], sizes = [2, 32], strides = [1, 1]} : vector<2x96xf32> to vector<2x32xf32>
    %170 = math.tanh %168 : vector<2x32xf32>
    %171 = arith.mulf %169, %170 : vector<2x32xf32>
    %172 = vector.extract_strided_slice %6 {offsets = [0, 4, 0], sizes = [2, 1, 128], strides = [1, 1, 1]} : vector<2x8x128xf32> to vector<2x1x128xf32>
    %173 = vector.shape_cast %172 : vector<2x1x128xf32> to vector<2x128xf32>
    %cst_31 = arith.constant dense<0.000000e+00> : vector<2x128xf32>
    %174 = tpu.matmul %152, %7, %cst_31 {dimension_numbers = #tpu.dot_dimension_numbers<[1], [0], [0], [1], [0, 0, 1, 1], [], []>} : vector<2x32xf32>, vector<32x128xf32>, vector<2x128xf32> -> vector<2x128xf32>
    %175 = arith.addf %173, %174 : vector<2x128xf32>
    %176 = vector.extract_strided_slice %175 {offsets = [0, 0], sizes = [2, 96], strides = [1, 1]} : vector<2x128xf32> to vector<2x96xf32>
    %177 = arith.negf %176 : vector<2x96xf32>
    %178 = math.exp %177 : vector<2x96xf32>
    %cst_32 = arith.constant 1.000000e+00 : f32
    %179 = vector.broadcast %cst_32 : f32 to vector<2x96xf32>
    %180 = arith.addf %179, %178 : vector<2x96xf32>
    %181 = arith.divf %179, %180 : vector<2x96xf32>
    %182 = vector.extract_strided_slice %175 {offsets = [0, 96], sizes = [2, 32], strides = [1, 1]} : vector<2x128xf32> to vector<2x32xf32>
    %183 = math.tanh %182 : vector<2x32xf32>
    %184 = vector.extract_strided_slice %181 {offsets = [0, 32], sizes = [2, 32], strides = [1, 1]} : vector<2x96xf32> to vector<2x32xf32>
    %185 = arith.mulf %184, %149 : vector<2x32xf32>
    %186 = vector.extract_strided_slice %181 {offsets = [0, 0], sizes = [2, 32], strides = [1, 1]} : vector<2x96xf32> to vector<2x32xf32>
    %187 = arith.mulf %186, %183 : vector<2x32xf32>
    %188 = arith.addf %185, %187 : vector<2x32xf32>
    %189 = vector.extract_strided_slice %181 {offsets = [0, 64], sizes = [2, 32], strides = [1, 1]} : vector<2x96xf32> to vector<2x32xf32>
    %190 = math.tanh %188 : vector<2x32xf32>
    %191 = arith.mulf %189, %190 : vector<2x32xf32>
    %192 = tpu.concatenate %191, %171 in 1 : vector<2x32xf32>, vector<2x32xf32> -> vector<2x64xf32>
    %cst_33 = arith.constant dense<0.000000e+00> : vector<2x128xf32>
    %193 = tpu.matmul %192, %8, %cst_33 {dimension_numbers = #tpu.dot_dimension_numbers<[1], [0], [0], [1], [0, 0, 1, 1], [], []>} : vector<2x64xf32>, vector<64x128xf32>, vector<2x128xf32> -> vector<2x128xf32>
    %194 = arith.addf %193, %11 : vector<2x128xf32>
    %195 = vector.extract_strided_slice %194 {offsets = [0, 0], sizes = [2, 96], strides = [1, 1]} : vector<2x128xf32> to vector<2x96xf32>
    %196 = arith.negf %195 : vector<2x96xf32>
    %197 = math.exp %196 : vector<2x96xf32>
    %cst_34 = arith.constant 1.000000e+00 : f32
    %198 = vector.broadcast %cst_34 : f32 to vector<2x96xf32>
    %199 = arith.addf %198, %197 : vector<2x96xf32>
    %200 = arith.divf %198, %199 : vector<2x96xf32>
    %201 = vector.extract_strided_slice %194 {offsets = [0, 96], sizes = [2, 32], strides = [1, 1]} : vector<2x128xf32> to vector<2x32xf32>
    %202 = math.tanh %201 : vector<2x32xf32>
    %203 = vector.extract_strided_slice %200 {offsets = [0, 32], sizes = [2, 32], strides = [1, 1]} : vector<2x96xf32> to vector<2x32xf32>
    %204 = arith.mulf %203, %168 : vector<2x32xf32>
    %205 = vector.extract_strided_slice %200 {offsets = [0, 0], sizes = [2, 32], strides = [1, 1]} : vector<2x96xf32> to vector<2x32xf32>
    %206 = arith.mulf %205, %202 : vector<2x32xf32>
    %207 = arith.addf %204, %206 : vector<2x32xf32>
    %208 = vector.extract_strided_slice %200 {offsets = [0, 64], sizes = [2, 32], strides = [1, 1]} : vector<2x96xf32> to vector<2x32xf32>
    %209 = math.tanh %207 : vector<2x32xf32>
    %210 = arith.mulf %208, %209 : vector<2x32xf32>
    %211 = vector.extract_strided_slice %6 {offsets = [0, 5, 0], sizes = [2, 1, 128], strides = [1, 1, 1]} : vector<2x8x128xf32> to vector<2x1x128xf32>
    %212 = vector.shape_cast %211 : vector<2x1x128xf32> to vector<2x128xf32>
    %cst_35 = arith.constant dense<0.000000e+00> : vector<2x128xf32>
    %213 = tpu.matmul %191, %7, %cst_35 {dimension_numbers = #tpu.dot_dimension_numbers<[1], [0], [0], [1], [0, 0, 1, 1], [], []>} : vector<2x32xf32>, vector<32x128xf32>, vector<2x128xf32> -> vector<2x128xf32>
    %214 = arith.addf %212, %213 : vector<2x128xf32>
    %215 = vector.extract_strided_slice %214 {offsets = [0, 0], sizes = [2, 96], strides = [1, 1]} : vector<2x128xf32> to vector<2x96xf32>
    %216 = arith.negf %215 : vector<2x96xf32>
    %217 = math.exp %216 : vector<2x96xf32>
    %cst_36 = arith.constant 1.000000e+00 : f32
    %218 = vector.broadcast %cst_36 : f32 to vector<2x96xf32>
    %219 = arith.addf %218, %217 : vector<2x96xf32>
    %220 = arith.divf %218, %219 : vector<2x96xf32>
    %221 = vector.extract_strided_slice %214 {offsets = [0, 96], sizes = [2, 32], strides = [1, 1]} : vector<2x128xf32> to vector<2x32xf32>
    %222 = math.tanh %221 : vector<2x32xf32>
    %223 = vector.extract_strided_slice %220 {offsets = [0, 32], sizes = [2, 32], strides = [1, 1]} : vector<2x96xf32> to vector<2x32xf32>
    %224 = arith.mulf %223, %188 : vector<2x32xf32>
    %225 = vector.extract_strided_slice %220 {offsets = [0, 0], sizes = [2, 32], strides = [1, 1]} : vector<2x96xf32> to vector<2x32xf32>
    %226 = arith.mulf %225, %222 : vector<2x32xf32>
    %227 = arith.addf %224, %226 : vector<2x32xf32>
    %228 = vector.extract_strided_slice %220 {offsets = [0, 64], sizes = [2, 32], strides = [1, 1]} : vector<2x96xf32> to vector<2x32xf32>
    %229 = math.tanh %227 : vector<2x32xf32>
    %230 = arith.mulf %228, %229 : vector<2x32xf32>
    %231 = tpu.concatenate %230, %210 in 1 : vector<2x32xf32>, vector<2x32xf32> -> vector<2x64xf32>
    %cst_37 = arith.constant dense<0.000000e+00> : vector<2x128xf32>
    %232 = tpu.matmul %231, %8, %cst_37 {dimension_numbers = #tpu.dot_dimension_numbers<[1], [0], [0], [1], [0, 0, 1, 1], [], []>} : vector<2x64xf32>, vector<64x128xf32>, vector<2x128xf32> -> vector<2x128xf32>
    %233 = arith.addf %232, %11 : vector<2x128xf32>
    %234 = vector.extract_strided_slice %233 {offsets = [0, 0], sizes = [2, 96], strides = [1, 1]} : vector<2x128xf32> to vector<2x96xf32>
    %235 = arith.negf %234 : vector<2x96xf32>
    %236 = math.exp %235 : vector<2x96xf32>
    %cst_38 = arith.constant 1.000000e+00 : f32
    %237 = vector.broadcast %cst_38 : f32 to vector<2x96xf32>
    %238 = arith.addf %237, %236 : vector<2x96xf32>
    %239 = arith.divf %237, %238 : vector<2x96xf32>
    %240 = vector.extract_strided_slice %233 {offsets = [0, 96], sizes = [2, 32], strides = [1, 1]} : vector<2x128xf32> to vector<2x32xf32>
    %241 = math.tanh %240 : vector<2x32xf32>
    %242 = vector.extract_strided_slice %239 {offsets = [0, 32], sizes = [2, 32], strides = [1, 1]} : vector<2x96xf32> to vector<2x32xf32>
    %243 = arith.mulf %242, %207 : vector<2x32xf32>
    %244 = vector.extract_strided_slice %239 {offsets = [0, 0], sizes = [2, 32], strides = [1, 1]} : vector<2x96xf32> to vector<2x32xf32>
    %245 = arith.mulf %244, %241 : vector<2x32xf32>
    %246 = arith.addf %243, %245 : vector<2x32xf32>
    %247 = vector.extract_strided_slice %239 {offsets = [0, 64], sizes = [2, 32], strides = [1, 1]} : vector<2x96xf32> to vector<2x32xf32>
    %248 = math.tanh %246 : vector<2x32xf32>
    %249 = arith.mulf %247, %248 : vector<2x32xf32>
    %250 = vector.extract_strided_slice %6 {offsets = [0, 6, 0], sizes = [2, 1, 128], strides = [1, 1, 1]} : vector<2x8x128xf32> to vector<2x1x128xf32>
    %251 = vector.shape_cast %250 : vector<2x1x128xf32> to vector<2x128xf32>
    %cst_39 = arith.constant dense<0.000000e+00> : vector<2x128xf32>
    %252 = tpu.matmul %230, %7, %cst_39 {dimension_numbers = #tpu.dot_dimension_numbers<[1], [0], [0], [1], [0, 0, 1, 1], [], []>} : vector<2x32xf32>, vector<32x128xf32>, vector<2x128xf32> -> vector<2x128xf32>
    %253 = arith.addf %251, %252 : vector<2x128xf32>
    %254 = vector.extract_strided_slice %253 {offsets = [0, 0], sizes = [2, 96], strides = [1, 1]} : vector<2x128xf32> to vector<2x96xf32>
    %255 = arith.negf %254 : vector<2x96xf32>
    %256 = math.exp %255 : vector<2x96xf32>
    %cst_40 = arith.constant 1.000000e+00 : f32
    %257 = vector.broadcast %cst_40 : f32 to vector<2x96xf32>
    %258 = arith.addf %257, %256 : vector<2x96xf32>
    %259 = arith.divf %257, %258 : vector<2x96xf32>
    %260 = vector.extract_strided_slice %253 {offsets = [0, 96], sizes = [2, 32], strides = [1, 1]} : vector<2x128xf32> to vector<2x32xf32>
    %261 = math.tanh %260 : vector<2x32xf32>
    %262 = vector.extract_strided_slice %259 {offsets = [0, 32], sizes = [2, 32], strides = [1, 1]} : vector<2x96xf32> to vector<2x32xf32>
    %263 = arith.mulf %262, %227 : vector<2x32xf32>
    %264 = vector.extract_strided_slice %259 {offsets = [0, 0], sizes = [2, 32], strides = [1, 1]} : vector<2x96xf32> to vector<2x32xf32>
    %265 = arith.mulf %264, %261 : vector<2x32xf32>
    %266 = arith.addf %263, %265 : vector<2x32xf32>
    %267 = vector.extract_strided_slice %259 {offsets = [0, 64], sizes = [2, 32], strides = [1, 1]} : vector<2x96xf32> to vector<2x32xf32>
    %268 = math.tanh %266 : vector<2x32xf32>
    %269 = arith.mulf %267, %268 : vector<2x32xf32>
    %270 = tpu.concatenate %269, %249 in 1 : vector<2x32xf32>, vector<2x32xf32> -> vector<2x64xf32>
    %cst_41 = arith.constant dense<0.000000e+00> : vector<2x128xf32>
    %271 = tpu.matmul %270, %8, %cst_41 {dimension_numbers = #tpu.dot_dimension_numbers<[1], [0], [0], [1], [0, 0, 1, 1], [], []>} : vector<2x64xf32>, vector<64x128xf32>, vector<2x128xf32> -> vector<2x128xf32>
    %272 = arith.addf %271, %11 : vector<2x128xf32>
    %273 = vector.extract_strided_slice %272 {offsets = [0, 0], sizes = [2, 96], strides = [1, 1]} : vector<2x128xf32> to vector<2x96xf32>
    %274 = arith.negf %273 : vector<2x96xf32>
    %275 = math.exp %274 : vector<2x96xf32>
    %cst_42 = arith.constant 1.000000e+00 : f32
    %276 = vector.broadcast %cst_42 : f32 to vector<2x96xf32>
    %277 = arith.addf %276, %275 : vector<2x96xf32>
    %278 = arith.divf %276, %277 : vector<2x96xf32>
    %279 = vector.extract_strided_slice %272 {offsets = [0, 96], sizes = [2, 32], strides = [1, 1]} : vector<2x128xf32> to vector<2x32xf32>
    %280 = math.tanh %279 : vector<2x32xf32>
    %281 = vector.extract_strided_slice %278 {offsets = [0, 32], sizes = [2, 32], strides = [1, 1]} : vector<2x96xf32> to vector<2x32xf32>
    %282 = arith.mulf %281, %246 : vector<2x32xf32>
    %283 = vector.extract_strided_slice %278 {offsets = [0, 0], sizes = [2, 32], strides = [1, 1]} : vector<2x96xf32> to vector<2x32xf32>
    %284 = arith.mulf %283, %280 : vector<2x32xf32>
    %285 = arith.addf %282, %284 : vector<2x32xf32>
    %286 = vector.extract_strided_slice %278 {offsets = [0, 64], sizes = [2, 32], strides = [1, 1]} : vector<2x96xf32> to vector<2x32xf32>
    %287 = math.tanh %285 : vector<2x32xf32>
    %288 = arith.mulf %286, %287 : vector<2x32xf32>
    %289 = vector.extract_strided_slice %6 {offsets = [0, 7, 0], sizes = [2, 1, 128], strides = [1, 1, 1]} : vector<2x8x128xf32> to vector<2x1x128xf32>
    %290 = vector.shape_cast %289 : vector<2x1x128xf32> to vector<2x128xf32>
    %cst_43 = arith.constant dense<0.000000e+00> : vector<2x128xf32>
    %291 = tpu.matmul %269, %7, %cst_43 {dimension_numbers = #tpu.dot_dimension_numbers<[1], [0], [0], [1], [0, 0, 1, 1], [], []>} : vector<2x32xf32>, vector<32x128xf32>, vector<2x128xf32> -> vector<2x128xf32>
    %292 = arith.addf %290, %291 : vector<2x128xf32>
    %293 = vector.extract_strided_slice %292 {offsets = [0, 0], sizes = [2, 96], strides = [1, 1]} : vector<2x128xf32> to vector<2x96xf32>
    %294 = arith.negf %293 : vector<2x96xf32>
    %295 = math.exp %294 : vector<2x96xf32>
    %cst_44 = arith.constant 1.000000e+00 : f32
    %296 = vector.broadcast %cst_44 : f32 to vector<2x96xf32>
    %297 = arith.addf %296, %295 : vector<2x96xf32>
    %298 = arith.divf %296, %297 : vector<2x96xf32>
    %299 = vector.extract_strided_slice %292 {offsets = [0, 96], sizes = [2, 32], strides = [1, 1]} : vector<2x128xf32> to vector<2x32xf32>
    %300 = math.tanh %299 : vector<2x32xf32>
    %301 = vector.extract_strided_slice %298 {offsets = [0, 32], sizes = [2, 32], strides = [1, 1]} : vector<2x96xf32> to vector<2x32xf32>
    %302 = arith.mulf %301, %266 : vector<2x32xf32>
    %303 = vector.extract_strided_slice %298 {offsets = [0, 0], sizes = [2, 32], strides = [1, 1]} : vector<2x96xf32> to vector<2x32xf32>
    %304 = arith.mulf %303, %300 : vector<2x32xf32>
    %305 = arith.addf %302, %304 : vector<2x32xf32>
    %306 = vector.extract_strided_slice %298 {offsets = [0, 64], sizes = [2, 32], strides = [1, 1]} : vector<2x96xf32> to vector<2x32xf32>
    %307 = math.tanh %305 : vector<2x32xf32>
    %308 = arith.mulf %306, %307 : vector<2x32xf32>
    %309 = tpu.concatenate %308, %288 in 1 : vector<2x32xf32>, vector<2x32xf32> -> vector<2x64xf32>
    %cst_45 = arith.constant dense<0.000000e+00> : vector<2x128xf32>
    %310 = tpu.matmul %309, %8, %cst_45 {dimension_numbers = #tpu.dot_dimension_numbers<[1], [0], [0], [1], [0, 0, 1, 1], [], []>} : vector<2x64xf32>, vector<64x128xf32>, vector<2x128xf32> -> vector<2x128xf32>
    %311 = arith.addf %310, %11 : vector<2x128xf32>
    %312 = vector.extract_strided_slice %311 {offsets = [0, 0], sizes = [2, 96], strides = [1, 1]} : vector<2x128xf32> to vector<2x96xf32>
    %313 = arith.negf %312 : vector<2x96xf32>
    %314 = math.exp %313 : vector<2x96xf32>
    %cst_46 = arith.constant 1.000000e+00 : f32
    %315 = vector.broadcast %cst_46 : f32 to vector<2x96xf32>
    %316 = arith.addf %315, %314 : vector<2x96xf32>
    %317 = arith.divf %315, %316 : vector<2x96xf32>
    %318 = vector.extract_strided_slice %311 {offsets = [0, 96], sizes = [2, 32], strides = [1, 1]} : vector<2x128xf32> to vector<2x32xf32>
    %319 = math.tanh %318 : vector<2x32xf32>
    %320 = vector.extract_strided_slice %317 {offsets = [0, 32], sizes = [2, 32], strides = [1, 1]} : vector<2x96xf32> to vector<2x32xf32>
    %321 = arith.mulf %320, %285 : vector<2x32xf32>
    %322 = vector.extract_strided_slice %317 {offsets = [0, 0], sizes = [2, 32], strides = [1, 1]} : vector<2x96xf32> to vector<2x32xf32>
    %323 = arith.mulf %322, %319 : vector<2x32xf32>
    %324 = arith.addf %321, %323 : vector<2x32xf32>
    %325 = vector.extract_strided_slice %317 {offsets = [0, 64], sizes = [2, 32], strides = [1, 1]} : vector<2x96xf32> to vector<2x32xf32>
    %326 = math.tanh %324 : vector<2x32xf32>
    %327 = arith.mulf %325, %326 : vector<2x32xf32>
    %c0_47 = arith.constant 0 : index
    %c0_48 = arith.constant 0 : index
    %328 = vector.load %arg8[%c0_47, %c0_48] : memref<32x128xf32, #tpu.memory_space<vmem>>, vector<32x128xf32>
    %cst_49 = arith.constant dense<0.000000e+00> : vector<2x128xf32>
    %329 = tpu.matmul %327, %328, %cst_49 {dimension_numbers = #tpu.dot_dimension_numbers<[1], [0], [0], [1], [0, 0, 1, 1], [], []>} : vector<2x32xf32>, vector<32x128xf32>, vector<2x128xf32> -> vector<2x128xf32>
    %c0_50 = arith.constant 0 : index
    %c0_51 = arith.constant 0 : index
    %330 = vector.load %arg9[%c0_50, %c0_51] : memref<1x128xf32, #tpu.memory_space<vmem>>, vector<1x128xf32>
    %331 = vector.broadcast %330 : vector<1x128xf32> to vector<2x128xf32>
    %332 = arith.addf %329, %331 : vector<2x128xf32>
    %cst_52 = arith.constant 0.000000e+00 : f32
    %333 = vector.broadcast %cst_52 : f32 to vector<2x128xf32>
    %334 = arith.cmpf ogt, %332, %333 : vector<2x128xf32>
    %cst_53 = arith.constant 0.00999999977 : f32
    %335 = vector.broadcast %cst_53 : f32 to vector<2x128xf32>
    %336 = arith.mulf %335, %332 : vector<2x128xf32>
    %337 = arith.select %334, %332, %336 : vector<2x128xi1>, vector<2x128xf32>
    %c0_54 = arith.constant 0 : index
    %c0_55 = arith.constant 0 : index
    %338 = vector.load %arg10[%c0_54, %c0_55] : memref<128x32xf32, #tpu.memory_space<vmem>>, vector<128x32xf32>
    %cst_56 = arith.constant dense<0.000000e+00> : vector<2x32xf32>
    %339 = tpu.matmul %337, %338, %cst_56 {dimension_numbers = #tpu.dot_dimension_numbers<[1], [0], [0], [1], [0, 0, 1, 1], [], []>} : vector<2x128xf32>, vector<128x32xf32>, vector<2x32xf32> -> vector<2x32xf32>
    %c0_57 = arith.constant 0 : index
    %c0_58 = arith.constant 0 : index
    %340 = vector.load %arg11[%c0_57, %c0_58] : memref<1x32xf32, #tpu.memory_space<vmem>>, vector<1x32xf32>
    %341 = vector.broadcast %340 : vector<1x32xf32> to vector<2x32xf32>
    %342 = arith.addf %339, %341 : vector<2x32xf32>
    %cst_59 = arith.constant 0.000000e+00 : f32
    %343 = vector.broadcast %cst_59 : f32 to vector<2x32xf32>
    %344 = arith.cmpf ogt, %342, %343 : vector<2x32xf32>
    %cst_60 = arith.constant 0.00999999977 : f32
    %345 = vector.broadcast %cst_60 : f32 to vector<2x32xf32>
    %346 = arith.mulf %345, %342 : vector<2x32xf32>
    %347 = arith.select %344, %342, %346 : vector<2x32xi1>, vector<2x32xf32>
    %c0_61 = arith.constant 0 : index
    %c0_62 = arith.constant 0 : index
    %348 = vector.load %arg12[%c0_61, %c0_62] : memref<32x8xf32, #tpu.memory_space<vmem>>, vector<32x8xf32>
    %cst_63 = arith.constant dense<0.000000e+00> : vector<2x8xf32>
    %349 = tpu.matmul %347, %348, %cst_63 {dimension_numbers = #tpu.dot_dimension_numbers<[1], [0], [0], [1], [0, 0, 1, 1], [], []>} : vector<2x32xf32>, vector<32x8xf32>, vector<2x8xf32> -> vector<2x8xf32>
    %c0_64 = arith.constant 0 : index
    %c0_65 = arith.constant 0 : index
    %350 = vector.load %arg13[%c0_64, %c0_65] : memref<1x8xf32, #tpu.memory_space<vmem>>, vector<1x8xf32>
    %351 = vector.broadcast %350 : vector<1x8xf32> to vector<2x8xf32>
    %352 = arith.addf %349, %351 : vector<2x8xf32>
    %353 = vector.extract_strided_slice %352 {offsets = [0, 0], sizes = [2, 4], strides = [1, 1]} : vector<2x8xf32> to vector<2x4xf32>
    %354 = math.tanh %353 : vector<2x4xf32>
    %355 = vector.extract_strided_slice %352 {offsets = [0, 4], sizes = [2, 4], strides = [1, 1]} : vector<2x8xf32> to vector<2x4xf32>
    %356 = arith.negf %355 : vector<2x4xf32>
    %357 = math.exp %356 : vector<2x4xf32>
    %cst_66 = arith.constant 1.000000e+00 : f32
    %358 = vector.broadcast %cst_66 : f32 to vector<2x4xf32>
    %359 = arith.addf %358, %357 : vector<2x4xf32>
    %360 = arith.divf %358, %359 : vector<2x4xf32>
    %cst_67 = arith.constant 1.000000e+00 : f32
    %361 = vector.broadcast %cst_67 : f32 to vector<2x4xf32>
    %362 = arith.subf %361, %360 : vector<2x4xf32>
    %363 = arith.mulf %354, %362 : vector<2x4xf32>
    %c0_68 = arith.constant 0 : index
    %c0_69 = arith.constant 0 : index
    %364 = vector.load %arg1[%c0_68, %c0_69] : memref<2x4xf32, #tpu.memory_space<vmem>>, vector<2x4xf32>
    %365 = arith.mulf %360, %364 : vector<2x4xf32>
    %366 = arith.addf %363, %365 : vector<2x4xf32>
    %cst_70 = arith.constant dense<0xFF800000> : vector<2xf32>
    %367 = vector.multi_reduction <maximumf>, %366, %cst_70 [1] : vector<2x4xf32> to vector<2xf32>
    %368 = vector.shape_cast %367 : vector<2xf32> to vector<2x1xf32>
    %369 = vector.broadcast %368 : vector<2x1xf32> to vector<2x4xf32>
    %370 = arith.subf %366, %369 : vector<2x4xf32>
    %371 = math.exp %370 : vector<2x4xf32>
    %cst_71 = arith.constant dense<0.000000e+00> : vector<2xf32>
    %372 = vector.multi_reduction <add>, %371, %cst_71 [1] : vector<2x4xf32> to vector<2xf32>
    %373 = vector.shape_cast %372 : vector<2xf32> to vector<2x1xf32>
    %374 = tpu.reciprocal %373 {approx = true} : vector<2x1xf32> -> vector<2x1xf32>
    %375 = vector.broadcast %374 : vector<2x1xf32> to vector<2x4xf32>
    %376 = arith.mulf %371, %375 : vector<2x4xf32>
    %c0_72 = arith.constant 0 : index
    %c0_73 = arith.constant 0 : index
    %377 = vector.load %arg22[%c0_72, %c0_73] : memref<2x4xf32, #tpu.memory_space<vmem>>, vector<2x4xf32>
    tpu.vector_store %arg22[%c0_72, %c0_73], %376 {strides = array<i32>} : memref<2x4xf32, #tpu.memory_space<vmem>>, vector<2x4xf32>,
    %c0_74 = arith.constant 0 : index
    %c0_75 = arith.constant 0 : index
    %378 = vector.load %arg14[%c0_74, %c0_75] : memref<32x64xf32, #tpu.memory_space<vmem>>, vector<32x64xf32>
    %cst_76 = arith.constant dense<0.000000e+00> : vector<2x64xf32>
    %379 = tpu.matmul %327, %378, %cst_76 {dimension_numbers = #tpu.dot_dimension_numbers<[1], [0], [0], [1], [0, 0, 1, 1], [], []>} : vector<2x32xf32>, vector<32x64xf32>, vector<2x64xf32> -> vector<2x64xf32>
    %c0_77 = arith.constant 0 : index
    %c0_78 = arith.constant 0 : index
    %380 = vector.load %arg1[%c0_77, %c0_78] : memref<2x4xf32, #tpu.memory_space<vmem>>, vector<2x4xf32>
    %c0_79 = arith.constant 0 : index
    %c0_80 = arith.constant 0 : index
    %381 = vector.load %arg15[%c0_79, %c0_80] : memref<4x64xf32, #tpu.memory_space<vmem>>, vector<4x64xf32>
    %cst_81 = arith.constant dense<0.000000e+00> : vector<2x64xf32>
    %382 = tpu.matmul %380, %381, %cst_81 {dimension_numbers = #tpu.dot_dimension_numbers<[1], [0], [0], [1], [0, 0, 1, 1], [], []>} : vector<2x4xf32>, vector<4x64xf32>, vector<2x64xf32> -> vector<2x64xf32>
    %383 = arith.addf %379, %382 : vector<2x64xf32>
    %c0_82 = arith.constant 0 : index
    %c0_83 = arith.constant 0 : index
    %384 = vector.load %arg2[%c0_82, %c0_83] : memref<2x4xf32, #tpu.memory_space<vmem>>, vector<2x4xf32>
    %c0_84 = arith.constant 0 : index
    %c0_85 = arith.constant 0 : index
    %385 = vector.load %arg16[%c0_84, %c0_85] : memref<4x64xf32, #tpu.memory_space<vmem>>, vector<4x64xf32>
    %cst_86 = arith.constant dense<0.000000e+00> : vector<2x64xf32>
    %386 = tpu.matmul %384, %385, %cst_86 {dimension_numbers = #tpu.dot_dimension_numbers<[1], [0], [0], [1], [0, 0, 1, 1], [], []>} : vector<2x4xf32>, vector<4x64xf32>, vector<2x64xf32> -> vector<2x64xf32>
    %387 = arith.addf %383, %386 : vector<2x64xf32>
    %c0_87 = arith.constant 0 : index
    %c0_88 = arith.constant 0 : index
    %388 = vector.load %arg17[%c0_87, %c0_88] : memref<1x64xf32, #tpu.memory_space<vmem>>, vector<1x64xf32>
    %389 = vector.broadcast %388 : vector<1x64xf32> to vector<2x64xf32>
    %390 = arith.addf %387, %389 : vector<2x64xf32>
    %cst_89 = arith.constant 0.000000e+00 : f32
    %391 = vector.broadcast %cst_89 : f32 to vector<2x64xf32>
    %392 = arith.cmpf ogt, %390, %391 : vector<2x64xf32>
    %cst_90 = arith.constant 0.00999999977 : f32
    %393 = vector.broadcast %cst_90 : f32 to vector<2x64xf32>
    %394 = arith.mulf %393, %390 : vector<2x64xf32>
    %395 = arith.select %392, %390, %394 : vector<2x64xi1>, vector<2x64xf32>
    %c0_91 = arith.constant 0 : index
    %c0_92 = arith.constant 0 : index
    %396 = vector.load %arg18[%c0_91, %c0_92] : memref<64x8xf32, #tpu.memory_space<vmem>>, vector<64x8xf32>
    %cst_93 = arith.constant dense<0.000000e+00> : vector<2x8xf32>
    %397 = tpu.matmul %395, %396, %cst_93 {dimension_numbers = #tpu.dot_dimension_numbers<[1], [0], [0], [1], [0, 0, 1, 1], [], []>} : vector<2x64xf32>, vector<64x8xf32>, vector<2x8xf32> -> vector<2x8xf32>
    %c0_94 = arith.constant 0 : index
    %c0_95 = arith.constant 0 : index
    %398 = vector.load %arg19[%c0_94, %c0_95] : memref<1x8xf32, #tpu.memory_space<vmem>>, vector<1x8xf32>
    %399 = vector.broadcast %398 : vector<1x8xf32> to vector<2x8xf32>
    %400 = arith.addf %397, %399 : vector<2x8xf32>
    %cst_96 = arith.constant 0.000000e+00 : f32
    %401 = vector.broadcast %cst_96 : f32 to vector<2x8xf32>
    %402 = arith.cmpf ogt, %400, %401 : vector<2x8xf32>
    %cst_97 = arith.constant 0.00999999977 : f32
    %403 = vector.broadcast %cst_97 : f32 to vector<2x8xf32>
    %404 = arith.mulf %403, %400 : vector<2x8xf32>
    %405 = arith.select %402, %400, %404 : vector<2x8xi1>, vector<2x8xf32>
    %c0_98 = arith.constant 0 : index
    %c0_99 = arith.constant 0 : index
    %406 = vector.load %arg20[%c0_98, %c0_99] : memref<8x1xf32, #tpu.memory_space<vmem>>, vector<8x1xf32>
    %cst_100 = arith.constant dense<0.000000e+00> : vector<2x1xf32>
    %407 = tpu.matmul %405, %406, %cst_100 {dimension_numbers = #tpu.dot_dimension_numbers<[1], [0], [0], [1], [0, 0, 1, 1], [], []>} : vector<2x8xf32>, vector<8x1xf32>, vector<2x1xf32> -> vector<2x1xf32>
    %c0_101 = arith.constant 0 : index
    %c0_102 = arith.constant 0 : index
    %408 = vector.load %arg21[%c0_101, %c0_102] : memref<1x1xf32, #tpu.memory_space<vmem>>, vector<1x1xf32>
    %409 = vector.broadcast %408 : vector<1x1xf32> to vector<2x1xf32>
    %410 = arith.addf %407, %409 : vector<2x1xf32>
    %c0_103 = arith.constant 0 : index
    %c0_104 = arith.constant 0 : index
    %411 = vector.load %arg23[%c0_103, %c0_104] : memref<2x1xf32, #tpu.memory_space<vmem>>, vector<2x1xf32>
    tpu.vector_store %arg23[%c0_103, %c0_104], %410 {strides = array<i32>} : memref<2x1xf32, #tpu.memory_space<vmem>>, vector<2x1xf32>,
    return
  }
}

</mosaic_0001>

<bundles_post_ra>
// kernel: tpu_custom_call.1
= control target key start
LH: loop header
LB: loop body
LE: loop exit
PB: predicated region body
PF: predicated region fallthrough
CT: control target
= control target key end

     0   :  { %s4711_s0 = inlined_call_operand.vmem [shape: f32[16,10], index: 0, kind: input, shape index: {}]   ;;  %s4712_s1 = inlined_call_operand.vmem [shape: f32[2,4], index: 1, kind: input, shape index: {}]   ;;  %s4713_s2 = inlined_call_operand.vmem [shape: f32[2,4], index: 2, kind: input, shape index: {}]   ;;  %s4714_s3 = inlined_call_operand.vmem [shape: f32[10,128], index: 3, kind: input, shape index: {}]   ;;  %s4715_s4 = inlined_call_operand.vmem [shape: f32[32,128], index: 4, kind: input, shape index: {}]   ;;  %s4716_s5 = inlined_call_operand.vmem [shape: f32[1,128], index: 5, kind: input, shape index: {}]   ;;  %s4717_s6 = inlined_call_operand.vmem [shape: f32[64,128], index: 6, kind: input, shape index: {}]   ;;  %s4718_s7 = inlined_call_operand.vmem [shape: f32[1,128], index: 7, kind: input, shape index: {}]   ;;  %s4719_s8 = inlined_call_operand.vmem [shape: f32[32,128], index: 8, kind: input, shape index: {}]   ;;  %s4720_s9 = inlined_call_operand.vmem [shape: f32[1,128], index: 9, kind: input, shape index: {}]   ;;  %s4721_s10 = inlined_call_operand.vmem [shape: f32[128,32], index: 10, kind: input, shape index: {}]   ;;  %s4722_s11 = inlined_call_operand.vmem [shape: f32[1,32], index: 11, kind: input, shape index: {}]   ;;  %s4723_s12 = inlined_call_operand.vmem [shape: f32[32,8], index: 12, kind: input, shape index: {}]   ;;  %s4724_s13 = inlined_call_operand.vmem [shape: f32[1,8], index: 13, kind: input, shape index: {}]   ;;  %s4725_s14 = inlined_call_operand.vmem [shape: f32[32,64], index: 14, kind: input, shape index: {}]   ;;  %s4726_s15 = inlined_call_operand.vmem [shape: f32[4,64], index: 15, kind: input, shape index: {}]   ;;  %s4727_s16 = inlined_call_operand.vmem [shape: f32[4,64], index: 16, kind: input, shape index: {}]   ;;  %s4728_s17 = inlined_call_operand.vmem [shape: f32[1,64], index: 17, kind: input, shape index: {}]   ;;  %s4729_s18 = inlined_call_operand.vmem [shape: f32[64,8], index: 18, kind: input, shape index: {}]   ;;  %s4730_s19 = inlined_call_operand.vmem [shape: f32[1,8], index: 19, kind: input, shape index: {}]   ;;  %s4731_s20 = inlined_call_operand.vmem [shape: f32[8,1], index: 20, kind: input, shape index: {}]   ;;  %s4732_s21 = inlined_call_operand.<no memory space> [shape: f32[1,1], index: 21, kind: input, shape index: {}]   ;;  %s4733_s22 = inlined_call_operand.hbm [shape: f32[2,4], index: 22, kind: output, shape index: {0}]   ;;  %s4734_s23 = inlined_call_operand.vmem [shape: f32[2,1], index: 23, kind: output, shape index: {1}]  }
   0x1   :  { %4741 = sst [smem:[#allocation6_spill]] %s4711_s0  ;;  %v29_v0 = vstv %s4732_s21 }
   0x2   :  { %4742 = sst [smem:[#allocation7_spill]] %s4712_s1  ;;  %30 = vst [vmem:[#allocation2] sm:$0x1] %v29_v0 }
   0x3   :  { %4743 = sst [smem:[#allocation8_spill]] %s4713_s2 }
   0x4   :  { %4744 = sst [smem:[#allocation9_spill]] %s4714_s3 }
   0x5   :  { %4745 = sst [smem:[#allocation10_spill]] %s4715_s4 }
   0x6   :  { %4746 = sst [smem:[#allocation11_spill]] %s4716_s5 }
   0x7   :  { %4747 = sst [smem:[#allocation12_spill]] %s4717_s6 }
   0x8   :  { %4748 = sst [smem:[#allocation13_spill]] %s4718_s7 }
   0x9   :  { %s4749_s5 = sld [smem:[#allocation9_spill]]  ;;  %vm94_vm0 = vcmask 1041408   ;;  %v3932_v3 = vmov 0.0|0.0   ;;  %vm3933_vm1 = vmmov 1   ;;  %s4750_s27 = sld [smem:[#allocation10_spill]]  ;;  %vm87_vm3 = vcmask 80896  }
   0xa   :  { %3497 = vmatprep.subr.bf16.mxu1 %v3932_v3  ;;  %vm3492_vm2 = vmpackc.low %vm94_vm0, %vm3933_vm1  ;;  %s4751_s3 = sld [smem:[#allocation6_spill]]  ;;  %vm3934_vm4 = vmmov 0   ;;  %v3935_v10 = vmov 0.0  }
   0xb   :  { %3157 = vmatprep.mubr.msk.f32.mxu1 %vm3934_vm4, %v3935_v10 }
   0xf   :  { %v78_v1 = vld [vmem:[%s4749_s5] sm:$0xff]  ;;  %v79_v2 = vld [vmem:[%s4749_s5 + $0x8] sm:$0x3]  ;;  %v175_v9 = vld [vmem:[%s4750_s27 + $0x10] sm:$0xff] }
  0x10   :  { %v3491_v4 = vpack.c.bf16 %v79_v2, %v78_v1  ;;  %v173_v5 = vld [vmem:[%s4750_s27] sm:$0xff]  ;;  %v174_v6 = vld [vmem:[%s4750_s27 + $0x8] sm:$0xff]  ;;  %v176_v11 = vld [vmem:[%s4750_s27 + $0x18] sm:$0xff] }
  0x11   :  { %v4078_v7 = vpack.c.bf16 %v174_v6, %v173_v5  ;;  %v76_v8 = vld [vmem:[%s4751_s3] sm:$0xff] }
  0x12   :  { %3493 = vmatprep.subr.msk.bf16.mxu0 %vm3492_vm2, %v3491_v4  ;;  %3146 = vmatprep.mubr.msk.f32.mxu0 %vm87_vm3, %v76_v8 }
  0x13   :  { %31 = vsyncpa [#allocation4], 0  ;;  %3499 = vmatpush3.bf16.msra.mxu1 %v4078_v7  ;;  %3496 = vmatpush3.bf16.msk.msra.mxu0 %vm3492_vm2, %v3491_v4  ;;  %v77_v12 = vld [vmem:[%s4751_s3 + $0x8] sm:$0xff]  ;;  %v4096_v13 = vpack.c.bf16 %v176_v11, %v175_v9  ;;  %s4752_s2 = sld [smem:[#allocation11_spill]]  ;;  %s3936_s6 = smov 32   ;;  %vm323_vm5 = vcmask 1041409  }
  0x14   :  { %3500 = vmatprep.subr.bf16.mxu1 %v3932_v3  ;;  %3503 = vmatprep.subr.bf16.mxu0 %v3932_v3  ;;  %s4753_s7 = sld [smem:[#allocation12_spill]]  ;;  %vm192_vm6 = vcmask 261120   ;;  %vm329_vm7 = vcmask 523264   ;;  %s4754_s3 = sld [smem:[#allocation13_spill]]  ;;  %vm562_vm8 = vcmask 1042434   ;;  %vm811_vm9 = vcmask 1043459  }
  0x15   :  { %s3938_s0 = smov 96   ;;  %vm1061_vm10 = vcmask 1044484   ;;  %vm1311_vm11 = vcmask 1045509   ;;  %vm1561_vm12 = vcmask 1046534   ;;  %vm1811_vm13 = vcmask 1047559   ;;  %s4755_s25 = sld [smem:[#allocation7_spill]] }
  0x16   :  { %3147 = vmatmul.mubr.msk.f32.vlgmr.msra.gmra.mrb[0].mxu0 %vm87_vm3, %v77_v12  ;;  %vm2076_vm14 = vcmask 1040384   ;;  %vm2492_vm0 = vcmask 1043456   ;;  %vm2488_vm1 = vcmask 31744   ;;  %s4756_s30 = sld [smem:[#allocation8_spill]]  ;;  %s3941_s4 = smov [#allocation3]  }
  0x17   :  { %3502 = vmatpush3.bf16.msra.mxu1 %v4096_v13  ;;  %3176 = vmatprep.mubr.msk.f32.mxu0 %vm3934_vm4, %v3935_v10 }
  0x18   :  { %3515 = vmatprep.subr.bf16.mxu1 %v3932_v3 }
  0x19   :  { %v2919_v16 = vld [vmem:[%s4752_s2] ss:$0 sm:$0xff] }
  0x1a   :  { %3158 = vmatmul.mubr.f32.vlgmr.msra.gmra.mrb[0].mxu1 %v3935_v10  ;;  %v177_v44 = vld [vmem:[%s4753_s7] sm:$0xff]  ;;  %v178_v45 = vld [vmem:[%s4753_s7 + $0x8] sm:$0xff]  ;;  %v179_v46 = vld [vmem:[%s4753_s7 + $0x10] sm:$0xff] }
  0x1b   :  { %3517 = vmatpush3.bf16.msra.mxu1 %v4078_v7  ;;  %3187 = vmatprep.mubr.msk.f32.mxu1 %vm3934_vm4, %v3935_v10  ;;  %v4140_v47 = vpack.c.bf16 %v178_v45, %v177_v44  ;;  %v180_v48 = vld [vmem:[%s4753_s7 + $0x18] sm:$0xff]  ;;  %v181_v50 = vld [vmem:[%s4753_s7 + $0x20] sm:$0xff]  ;;  %v182_v51 = vld [vmem:[%s4753_s7 + $0x28] sm:$0xff] }
  0x1c   :  { %3518 = vmatprep.subr.bf16.mxu1 %v3932_v3  ;;  %v4146_v49 = vpack.c.bf16 %v180_v48, %v179_v46  ;;  %v4157_v53 = vpack.c.bf16 %v182_v51, %v181_v50  ;;  %v183_v54 = vld [vmem:[%s4753_s7 + $0x30] sm:$0xff]  ;;  %v184_v55 = vld [vmem:[%s4753_s7 + $0x38] sm:$0xff]  ;;  %s3937_s7 = smov 64   ;;  %v4199_v12 = vld [vmem:[%s4754_s3] ss:$0 sm:$0xff] }
  0x1d   :  { %3505 = vmatpush3.bf16.msra.mxu0 %v4140_v47  ;;  %v4168_v57 = vpack.c.bf16 %v184_v55, %v183_v54 }
  0x1e   :  { %3506 = vmatprep.subr.bf16.mxu0 %v3932_v3 }
  0x1f   :  { %3520 = vmatpush3.bf16.msra.mxu1 %v4096_v13 }
  0x20   :  { %3521 = vmatprep.subr.bf16.mxu1 %v3932_v3 }
  0x21   :  { %3508 = vmatpush3.bf16.msra.mxu0 %v4146_v49 }
  0x22   :  { %3509 = vmatprep.subr.bf16.mxu0 %v3932_v3 }
  0x25   :  { %3511 = vmatpush3.bf16.msra.mxu0 %v4157_v53 }
  0x26   :  { %3512 = vmatprep.subr.bf16.mxu0 %v3932_v3 }
  0x29   :  { %3514 = vmatpush3.bf16.msra.mxu0 %v4168_v57 }
  0x2a   :  { %3533 = vmatprep.subr.bf16.mxu0 %v3932_v3 }
  0xe9   :  { %v3148_v14 = vpop.f32.mrb[0].mxu0 }
  0xea   :  { %v164_v15 = vpop.f32.mrb[1].mxu0  ;;  %v4115_v17 = vadd.f32 %v3148_v14, %v2919_v16 }
  0xeb   :  { %v4117_v21 = vadd.f32 %v2919_v16, %v164_v15 }
  0xed   :  { %v262_v18 = vpop.f32.mrb[0].mxu1 }
  0xee   :  { %v267_v19 = vrot.slane %v262_v18, 1  ;;  %v3159_v20 = vpop.f32.mrb[1].mxu1  ;;  %v270_v23 = vadd.f32 %v262_v18, %v4117_v21 }
  0xf0   :  { %v271_v22 = vadd.f32 %v267_v19, %v4115_v17  ;;  %v2924_v27 = vmul.f32 -1.442695, %v270_v23 }
  0xf2   :  { %3705 = vtanh.f32 %v271_v22  ;;  %v2925_v26 = vmul.f32 -1.442695, %v271_v22 }
  0xf3   :  { %3707 = vtanh.f32 %v270_v23 }
  0xf4   :  { %3709 = vpow2.f32 %v2925_v26 }
  0xf5   :  { %3711 = vpow2.f32 %v2924_v27 }
  0xfc   :  { %v3706_v24 = vpop.eup %3705 }
  0xfd   :  { %292 = vrot.lane.b32.xlu0 %v3706_v24, %s3936_s6  ;;  %v3708_v25 = vpop.eup %3707 }
  0xfe   :  { %v3710_v28 = vpop.eup %3709 }
  0xff   :  { %v279_v29 = vadd.f32 1.0, %v3710_v28  ;;  %v3712_v30 = vpop.eup %3711 }
 0x100   :  { %v278_v31 = vadd.f32 1.0, %v3712_v30 }
 0x101   :  { %290 = vrot.lane.b32.xlu0 %v3708_v25, %s3936_s6  ;;  %3713 = vrcp.f32 %v279_v29 }
 0x102   :  { %3715 = vrcp.f32 %v278_v31 }
 0x10b   :  { %v3714_v32 = vpop.eup %3713 }
 0x10c   :  { %v3716_v35 = vpop.eup %3715  ;;  %v287_v38 = vmul.f32 0.0, %v3714_v32 }
 0x10d   :  { %v286_v41 = vmul.f32 0.0, %v3716_v35 }
 0x16f   :  { %v293_v33 = vpop.permute.xlu0 %292 }
 0x170   :  { %v297_v34 = vmul.f32 %v3714_v32, %v293_v33 }
 0x172   :  { %302 = vrot.lane.b32.xlu1 %v297_v34, %s3936_s6 }
 0x173   :  { %v291_v36 = vpop.permute.xlu0 %290 }
 0x174   :  { %v296_v37 = vmul.f32 %v3716_v35, %v291_v36 }
 0x176   :  { %300 = vrot.lane.b32.xlu1 %v296_v37, %s3936_s6 }
 0x1e4   :  { %v303_v39 = vpop.permute.xlu1 %302 }
 0x1e5   :  { %v4125_v40 = vadd.f32 %v303_v39, %v287_v38 }
 0x1e7   :  { %3717 = vtanh.f32 %v4125_v40  ;;  %v522_v38 = vrot.slane %v4125_v40, 7 }
 0x1e8   :  { %v301_v42 = vpop.permute.xlu1 %300 }
 0x1e9   :  { %v4128_v43 = vadd.f32 %v301_v42, %v286_v41 }
 0x1eb   :  { %3719 = vtanh.f32 %v4128_v43  ;;  %v521_v41 = vrot.slane %v4128_v43, 7 }
 0x1f1   :  { %v3718_v52 = vpop.eup %3717 }
 0x1f2   :  { %314 = vrot.lane.b32.xlu0 %v3718_v52, %s3936_s6 }
 0x1f5   :  { %v3720_v56 = vpop.eup %3719 }
 0x1f6   :  { %312 = vrot.lane.b32.xlu1 %v3720_v56, %s3936_s6 }
 0x264   :  { %v315_v58 = vpop.permute.xlu0 %314 }
 0x265   :  { %v319_v59 = vmul.f32 %v3714_v32, %v315_v58 }
 0x267   :  { %v322_v61 = vrot.slane %v319_v59, 7 }
 0x268   :  { %v313_v60 = vpop.permute.xlu1 %312 }
 0x269   :  { %v318_v62 = vmul.f32 %v3716_v35, %v313_v60 }
 0x26b   :  { %v324_v63 = vsel %vm323_vm5, %v322_v61, %v318_v62 }
 0x26c   :  { %325 = vrot.lane.b32.xlu0 %v324_v63, %s3937_s7 }
 0x2de   :  { %v326_v0 = vpop.permute.xlu0 %325 }
 0x2df   :  { %v328_v1 = vsel %vm192_vm6, %v326_v0, 0.0  ;;  %3188 = vmatmul.mubr.msk.f32.vlgmr.msra.gmra.mrb[2].mxu1 %vm192_vm6, %v326_v0 }
 0x2e0   :  { %3177 = vmatmul.mubr.msk.f32.vlgmr.msra.gmra.mrb[2].mxu0 %vm329_vm7, %v328_v1  ;;  %3523 = vmatpush3.bf16.msra.mxu1 %v4140_v47 }
 0x2e1   :  { %3524 = vmatprep.subr.bf16.mxu1 %v3932_v3  ;;  %3535 = vmatpush3.bf16.msra.mxu0 %v4078_v7 }
 0x2e2   :  { %3536 = vmatprep.subr.bf16.mxu0 %v3932_v3  ;;  %3217 = vmatprep.mubr.msk.f32.mxu0 %vm3934_vm4, %v3935_v10 }
 0x2e3   :  { %3206 = vmatprep.mubr.msk.f32.mxu1 %vm3934_vm4, %v3935_v10 }
 0x2e4   :  { %3526 = vmatpush3.bf16.msra.mxu1 %v4146_v49 }
 0x2e5   :  { %3527 = vmatprep.subr.bf16.mxu1 %v3932_v3  ;;  %3538 = vmatpush3.bf16.msra.mxu0 %v4096_v13 }
 0x2e6   :  { %3539 = vmatprep.subr.bf16.mxu0 %v3932_v3 }
 0x2e8   :  { %3529 = vmatpush3.bf16.msra.mxu1 %v4157_v53 }
 0x2e9   :  { %3530 = vmatprep.subr.bf16.mxu1 %v3932_v3 }
 0x2ec   :  { %3532 = vmatpush3.bf16.msra.mxu1 %v4168_v57 }
 0x2ed   :  { %3551 = vmatprep.subr.bf16.mxu1 %v3932_v3 }
 0x3b2   :  { %v495_v2 = vpop.f32.mrb[2].mxu1 }
 0x3b3   :  { %v500_v4 = vrot.slane %v495_v2, 7  ;;  %v504_v5 = vadd.f32 %v495_v2, %v4115_v17  ;;  %v399_v6 = vpop.f32.mrb[2].mxu0  ;;  %v3189_v8 = vpop.f32.mrb[3].mxu1 }
 0x3b4   :  { %v3178_v9 = vpop.f32.mrb[3].mxu0  ;;  %v400_v14 = vadd.f32 %v4199_v12, %v399_v6 }
 0x3b5   :  { %v503_v11 = vadd.f32 %v500_v4, %v4117_v21  ;;  %3721 = vtanh.f32 %v504_v5  ;;  %v2930_v19 = vmul.f32 -1.442695, %v504_v5 }
 0x3b6   :  { %v2927_v22 = vmul.f32 -1.442695, %v400_v14 }
 0x3b7   :  { %3723 = vtanh.f32 %v503_v11  ;;  %v2929_v20 = vmul.f32 -1.442695, %v503_v11 }
 0x3b8   :  { %3725 = vtanh.f32 %v400_v14 }
 0x3b9   :  { %3727 = vpow2.f32 %v2930_v19 }
 0x3ba   :  { %3729 = vpow2.f32 %v2929_v20 }
 0x3bb   :  { %3731 = vpow2.f32 %v2927_v22 }
 0x3bf   :  { %v3722_v15 = vpop.eup %3721 }
 0x3c0   :  { %531 = vrot.lane.b32.xlu0 %v3722_v15, %s3936_s6 }
 0x3c1   :  { %v3724_v16 = vpop.eup %3723 }
 0x3c2   :  { %529 = vrot.lane.b32.xlu1 %v3724_v16, %s3936_s6  ;;  %v3726_v18 = vpop.eup %3725 }
 0x3c3   :  { %v3728_v23 = vpop.eup %3727 }
 0x3c4   :  { %v3730_v24 = vpop.eup %3729  ;;  %v512_v25 = vadd.f32 1.0, %v3728_v23 }
 0x3c5   :  { %v511_v26 = vadd.f32 1.0, %v3730_v24  ;;  %v3732_v27 = vpop.eup %3731 }
 0x3c6   :  { %412 = vrot.lane.b32.xlu1 %v3726_v18, %s3936_s6  ;;  %3733 = vrcp.f32 %v512_v25  ;;  %v406_v28 = vadd.f32 1.0, %v3732_v27 }
 0x3c7   :  { %3735 = vrcp.f32 %v511_v26 }
 0x3c8   :  { %3737 = vrcp.f32 %v406_v28 }
 0x3d0   :  { %v3734_v29 = vpop.eup %3733 }
 0x3d1   :  { %v3736_v32 = vpop.eup %3735  ;;  %v526_v39 = vmul.f32 %v3734_v29, %v522_v38 }
 0x3d2   :  { %v3738_v35 = vpop.eup %3737  ;;  %v525_v45 = vmul.f32 %v3736_v32, %v521_v41 }
 0x3d3   :  { %v410_v50 = vmul.f32 0.0, %v3738_v35 }
 0x432   :  { %v532_v30 = vpop.permute.xlu0 %531 }
 0x433   :  { %v536_v31 = vmul.f32 %v3734_v29, %v532_v30 }
 0x434   :  { %v530_v33 = vpop.permute.xlu1 %529 }
 0x435   :  { %541 = vrot.lane.b32.xlu1 %v536_v31, %s3936_s6  ;;  %v535_v34 = vmul.f32 %v3736_v32, %v530_v33 }
 0x437   :  { %539 = vrot.lane.b32.xlu0 %v535_v34, %s3936_s6 }
 0x438   :  { %v413_v36 = vpop.permute.xlu1 %412 }
 0x439   :  { %v415_v37 = vmul.f32 %v3738_v35, %v413_v36 }
 0x43b   :  { %417 = vrot.lane.b32.xlu0 %v415_v37, %s3936_s6 }
 0x4a7   :  { %v542_v42 = vpop.permute.xlu1 %541 }
 0x4a8   :  { %v4210_v44 = vadd.f32 %v542_v42, %v526_v39 }
 0x4a9   :  { %v540_v46 = vpop.permute.xlu0 %539 }
 0x4aa   :  { %3739 = vtanh.f32 %v4210_v44  ;;  %v4213_v48 = vadd.f32 %v540_v46, %v525_v45 }
 0x4ac   :  { %3741 = vtanh.f32 %v4213_v48 }
 0x4ad   :  { %v418_v51 = vpop.permute.xlu0 %417 }
 0x4ae   :  { %v4216_v52 = vadd.f32 %v418_v51, %v410_v50  ;;  %v770_v51 = vrot.slane %v4213_v48, 7 }
 0x4b0   :  { %3743 = vtanh.f32 %v4216_v52 }
 0x4b4   :  { %v3740_v40 = vpop.eup %3739 }
 0x4b5   :  { %553 = vrot.lane.b32.xlu0 %v3740_v40, %s3936_s6  ;;  %v771_v40 = vrot.slane %v4210_v44, 7 }
 0x4b6   :  { %v3742_v43 = vpop.eup %3741 }
 0x4b7   :  { %551 = vrot.lane.b32.xlu1 %v3742_v43, %s3936_s6 }
 0x4ba   :  { %v3744_v54 = vpop.eup %3743 }
 0x4bb   :  { %423 = vrot.lane.b32.xlu1 %v3744_v54, %s3936_s6 }
 0x527   :  { %v554_v55 = vpop.permute.xlu0 %553 }
 0x528   :  { %v558_v56 = vmul.f32 %v3734_v29, %v554_v55 }
 0x529   :  { %v552_v59 = vpop.permute.xlu1 %551 }
 0x52a   :  { %v561_v58 = vrot.slane %v558_v56, 7  ;;  %v557_v60 = vmul.f32 %v3736_v32, %v552_v59 }
 0x52c   :  { %v671_v61 = vrot.slane %v557_v60, 1  ;;  %v563_v62 = vsel %vm562_vm8, %v561_v58, %v557_v60 }
 0x52d   :  { %564 = vrot.lane.b32.xlu0 %v563_v62, %s3937_s7  ;;  %v424_v63 = vpop.permute.xlu1 %423 }
 0x52e   :  { %v426_v0 = vmul.f32 %v3738_v35, %v424_v63  ;;  %v672_v2 = vsel %vm323_vm5, %v558_v56, %v671_v61 }
 0x530   :  { %v568_v1 = vrot.slane %v426_v0, 7 }
 0x531   :  { %673 = vrot.lane.b32.xlu0 %v672_v2, %s3937_s7 }
 0x532   :  { %569 = vrot.lane.b32.xlu1 %v568_v1, %s3938_s0 }
 0x59f   :  { %v565_v4 = vpop.permute.xlu0 %564 }
 0x5a3   :  { %v674_v5 = vpop.permute.xlu0 %673 }
 0x5a4   :  { %3218 = vmatmul.mubr.msk.f32.vlgmr.msra.gmra.mrb[4].mxu0 %vm192_vm6, %v674_v5  ;;  %v570_v6 = vpop.permute.xlu1 %569 }
 0x5a5   :  { %v572_v8 = vsel %vm192_vm6, %v565_v4, %v570_v6  ;;  %3541 = vmatpush3.bf16.msra.mxu0 %v4140_v47  ;;  %3236 = vmatprep.mubr.msk.f32.mxu0 %vm3934_vm4, %v3935_v10 }
 0x5a6   :  { %v574_v9 = vrot.slane %v572_v8, 1  ;;  %3542 = vmatprep.subr.bf16.mxu0 %v3932_v3 }
 0x5a8   :  { %3207 = vmatmul.mubr.msk.f32.vlgmr.msra.gmra.mrb[4].mxu1 %vm329_vm7, %v574_v9 }
 0x5a9   :  { %3544 = vmatpush3.bf16.msra.mxu0 %v4146_v49  ;;  %3553 = vmatpush3.bf16.msra.mxu1 %v4078_v7 }
 0x5aa   :  { %3545 = vmatprep.subr.bf16.mxu0 %v3932_v3  ;;  %3554 = vmatprep.subr.bf16.mxu1 %v3932_v3 }
 0x5ab   :  { %3247 = vmatprep.mubr.msk.f32.mxu1 %vm3934_vm4, %v3935_v10 }
 0x5ad   :  { %3547 = vmatpush3.bf16.msra.mxu0 %v4157_v53  ;;  %3556 = vmatpush3.bf16.msra.mxu1 %v4096_v13 }
 0x5ae   :  { %3548 = vmatprep.subr.bf16.mxu0 %v3932_v3  ;;  %3557 = vmatprep.subr.bf16.mxu1 %v3932_v3 }
 0x5b1   :  { %3550 = vmatpush3.bf16.msra.mxu0 %v4168_v57 }
 0x5b2   :  { %3569 = vmatprep.subr.bf16.mxu0 %v3932_v3 }
 0x677   :  { %v743_v11 = vpop.f32.mrb[4].mxu0 }
 0x678   :  { %v748_v14 = vrot.slane %v743_v11, 6  ;;  %v749_v15 = vrot.slane %v743_v11, 7  ;;  %v3219_v16 = vpop.f32.mrb[5].mxu0 }
 0x67a   :  { %v752_v18 = vadd.f32 %v748_v14, %v4117_v21  ;;  %v753_v19 = vadd.f32 %v749_v15, %v4115_v17 }
 0x67b   :  { %v643_v20 = vpop.f32.mrb[4].mxu1 }
 0x67c   :  { %3745 = vtanh.f32 %v752_v18  ;;  %v3208_v22 = vpop.f32.mrb[5].mxu1  ;;  %v644_v23 = vadd.f32 %v4199_v12, %v643_v20  ;;  %v2934_v27 = vmul.f32 -1.442695, %v752_v18  ;;  %v2935_v28 = vmul.f32 -1.442695, %v753_v19 }
 0x67d   :  { %3747 = vtanh.f32 %v753_v19 }
 0x67e   :  { %3749 = vtanh.f32 %v644_v23  ;;  %v2932_v29 = vmul.f32 -1.442695, %v644_v23 }
 0x67f   :  { %3751 = vpow2.f32 %v2934_v27 }
 0x680   :  { %3753 = vpow2.f32 %v2935_v28 }
 0x681   :  { %3755 = vpow2.f32 %v2932_v29 }
 0x686   :  { %v3746_v24 = vpop.eup %3745 }
 0x687   :  { %v3748_v25 = vpop.eup %3747  ;;  %778 = vrot.lane.b32.xlu1 %v3746_v24, %s3936_s6 }
 0x688   :  { %780 = vrot.lane.b32.xlu0 %v3748_v25, %s3936_s6  ;;  %v3750_v26 = vpop.eup %3749 }
 0x689   :  { %v3752_v30 = vpop.eup %3751 }
 0x68a   :  { %v3754_v31 = vpop.eup %3753  ;;  %v760_v32 = vadd.f32 1.0, %v3752_v30 }
 0x68b   :  { %656 = vrot.lane.b32.xlu1 %v3750_v26, %s3936_s6  ;;  %v761_v33 = vadd.f32 1.0, %v3754_v31  ;;  %v3756_v34 = vpop.eup %3755 }
 0x68c   :  { %3757 = vrcp.f32 %v760_v32  ;;  %v650_v35 = vadd.f32 1.0, %v3756_v34 }
 0x68d   :  { %3759 = vrcp.f32 %v761_v33 }
 0x68e   :  { %3761 = vrcp.f32 %v650_v35 }
 0x696   :  { %v3758_v36 = vpop.eup %3757 }
 0x697   :  { %v3760_v38 = vpop.eup %3759  ;;  %v774_v43 = vmul.f32 %v3758_v36, %v770_v51 }
 0x698   :  { %v3762_v45 = vpop.eup %3761  ;;  %v775_v54 = vmul.f32 %v3760_v38, %v771_v40 }
 0x699   :  { %v654_v60 = vmul.f32 %v3762_v45, %v4216_v52 }
 0x6f9   :  { %v779_v37 = vpop.permute.xlu1 %778 }
 0x6fa   :  { %v781_v39 = vpop.permute.xlu0 %780  ;;  %v784_v41 = vmul.f32 %v3758_v36, %v779_v37 }
 0x6fb   :  { %v785_v42 = vmul.f32 %v3760_v38, %v781_v39 }
 0x6fc   :  { %788 = vrot.lane.b32.xlu0 %v784_v41, %s3936_s6 }
 0x6fd   :  { %790 = vrot.lane.b32.xlu1 %v785_v42, %s3936_s6  ;;  %v657_v46 = vpop.permute.xlu1 %656 }
 0x6fe   :  { %v659_v50 = vmul.f32 %v3762_v45, %v657_v46 }
 0x700   :  { %661 = vrot.lane.b32.xlu0 %v659_v50, %s3936_s6 }
 0x76e   :  { %v789_v55 = vpop.permute.xlu0 %788 }
 0x76f   :  { %v791_v56 = vpop.permute.xlu1 %790  ;;  %v4256_v58 = vadd.f32 %v789_v55, %v774_v43 }
 0x770   :  { %v4258_v59 = vadd.f32 %v791_v56, %v775_v54 }
 0x771   :  { %3763 = vtanh.f32 %v4256_v58 }
 0x772   :  { %3765 = vtanh.f32 %v4258_v59  ;;  %v662_v61 = vpop.permute.xlu0 %661 }
 0x773   :  { %v4263_v62 = vadd.f32 %v662_v61, %v654_v60 }
 0x775   :  { %3767 = vtanh.f32 %v4263_v62 }
 0x77b   :  { %v3764_v44 = vpop.eup %3763 }
 0x77c   :  { %v3766_v48 = vpop.eup %3765  ;;  %800 = vrot.lane.b32.xlu1 %v3764_v44, %s3936_s6  ;;  %v1020_v44 = vrot.slane %v4256_v58, 7 }
 0x77d   :  { %802 = vrot.lane.b32.xlu0 %v3766_v48, %s3936_s6  ;;  %v1021_v48 = vrot.slane %v4258_v59, 7 }
 0x77f   :  { %v3768_v63 = vpop.eup %3767 }
 0x780   :  { %667 = vrot.lane.b32.xlu1 %v3768_v63, %s3936_s6 }
 0x7ee   :  { %v801_v0 = vpop.permute.xlu1 %800 }
 0x7ef   :  { %v803_v1 = vpop.permute.xlu0 %802  ;;  %v806_v4 = vmul.f32 %v3758_v36, %v801_v0 }
 0x7f0   :  { %v807_v2 = vmul.f32 %v3760_v38, %v803_v1 }
 0x7f1   :  { %v920_v8 = vrot.slane %v806_v4, 2 }
 0x7f2   :  { %v810_v52 = vrot.slane %v807_v2, 7  ;;  %v668_v5 = vpop.permute.xlu1 %667  ;;  %v921_v6 = vrot.slane %v807_v2, 1 }
 0x7f3   :  { %v670_v9 = vmul.f32 %v3762_v45, %v668_v5 }
 0x7f4   :  { %v812_v11 = vsel %vm811_vm9, %v810_v52, %v806_v4  ;;  %v922_v15 = vsel %vm323_vm5, %v921_v6, %v920_v8 }
 0x7f5   :  { %813 = vrot.lane.b32.xlu0 %v812_v11, %s3937_s7  ;;  %v817_v14 = vrot.slane %v670_v9, 6 }
 0x7f7   :  { %818 = vrot.lane.b32.xlu1 %v817_v14, %s3938_s0 }
 0x7f9   :  { %923 = vrot.lane.b32.xlu0 %v922_v15, %s3937_s7 }
 0x867   :  { %v814_v16 = vpop.permute.xlu0 %813 }
 0x869   :  { %v819_v18 = vpop.permute.xlu1 %818 }
 0x86a   :  { %v821_v19 = vsel %vm192_vm6, %v814_v16, %v819_v18 }
 0x86b   :  { %v924_v20 = vpop.permute.xlu0 %923  ;;  %v823_v22 = vrot.slane %v821_v19, 2 }
 0x86c   :  { %3248 = vmatmul.mubr.msk.f32.vlgmr.msra.gmra.mrb[6].mxu1 %vm192_vm6, %v924_v20 }
 0x86d   :  { %3559 = vmatpush3.bf16.msra.mxu1 %v4140_v47  ;;  %3266 = vmatprep.mubr.msk.f32.mxu1 %vm3934_vm4, %v3935_v10 }
 0x86e   :  { %3237 = vmatmul.mubr.msk.f32.vlgmr.msra.gmra.mrb[6].mxu0 %vm329_vm7, %v823_v22  ;;  %3560 = vmatprep.subr.bf16.mxu1 %v3932_v3 }
 0x86f   :  { %3571 = vmatpush3.bf16.msra.mxu0 %v4078_v7  ;;  %3277 = vmatprep.mubr.msk.f32.mxu0 %vm3934_vm4, %v3935_v10 }
 0x870   :  { %3572 = vmatprep.subr.bf16.mxu0 %v3932_v3 }
 0x871   :  { %3562 = vmatpush3.bf16.msra.mxu1 %v4146_v49 }
 0x872   :  { %3563 = vmatprep.subr.bf16.mxu1 %v3932_v3 }
 0x873   :  { %3574 = vmatpush3.bf16.msra.mxu0 %v4096_v13 }
 0x874   :  { %3575 = vmatprep.subr.bf16.mxu0 %v3932_v3 }
 0x875   :  { %3565 = vmatpush3.bf16.msra.mxu1 %v4157_v53 }
 0x876   :  { %3566 = vmatprep.subr.bf16.mxu1 %v3932_v3 }
 0x879   :  { %3568 = vmatpush3.bf16.msra.mxu1 %v4168_v57 }
 0x87a   :  { %3587 = vmatprep.subr.bf16.mxu1 %v3932_v3 }
 0x93f   :  { %v993_v23 = vpop.f32.mrb[6].mxu1 }
 0x940   :  { %v998_v24 = vrot.slane %v993_v23, 5  ;;  %v999_v25 = vrot.slane %v993_v23, 6  ;;  %v3249_v26 = vpop.f32.mrb[7].mxu1 }
 0x941   :  { %v892_v27 = vpop.f32.mrb[6].mxu0 }
 0x942   :  { %v1002_v28 = vadd.f32 %v998_v24, %v4117_v21  ;;  %v1003_v29 = vadd.f32 %v999_v25, %v4115_v17  ;;  %v3238_v30 = vpop.f32.mrb[7].mxu0  ;;  %v893_v31 = vadd.f32 %v4199_v12, %v892_v27 }
 0x944   :  { %3769 = vtanh.f32 %v1002_v28  ;;  %v2939_v35 = vmul.f32 -1.442695, %v1002_v28  ;;  %v2940_v36 = vmul.f32 -1.442695, %v1003_v29  ;;  %v2937_v37 = vmul.f32 -1.442695, %v893_v31 }
 0x945   :  { %3771 = vtanh.f32 %v1003_v29 }
 0x946   :  { %3773 = vtanh.f32 %v893_v31 }
 0x947   :  { %3775 = vpow2.f32 %v2939_v35 }
 0x948   :  { %3777 = vpow2.f32 %v2940_v36 }
 0x949   :  { %3779 = vpow2.f32 %v2937_v37 }
 0x94e   :  { %v3770_v32 = vpop.eup %3769 }
 0x94f   :  { %v3772_v33 = vpop.eup %3771  ;;  %1028 = vrot.lane.b32.xlu1 %v3770_v32, %s3936_s6 }
 0x950   :  { %1030 = vrot.lane.b32.xlu0 %v3772_v33, %s3936_s6  ;;  %v3774_v34 = vpop.eup %3773 }
 0x951   :  { %v3776_v38 = vpop.eup %3775 }
 0x952   :  { %v3778_v39 = vpop.eup %3777  ;;  %v1010_v41 = vadd.f32 1.0, %v3776_v38 }
 0x953   :  { %905 = vrot.lane.b32.xlu1 %v3774_v34, %s3936_s6  ;;  %v1011_v42 = vadd.f32 1.0, %v3778_v39  ;;  %v3780_v45 = vpop.eup %3779 }
 0x954   :  { %3781 = vrcp.f32 %v1010_v41  ;;  %v899_v46 = vadd.f32 1.0, %v3780_v45 }
 0x955   :  { %3783 = vrcp.f32 %v1011_v42 }
 0x956   :  { %3785 = vrcp.f32 %v899_v46 }
 0x95e   :  { %v3782_v50 = vpop.eup %3781 }
 0x95f   :  { %v3784_v40 = vpop.eup %3783  ;;  %v1024_v63 = vmul.f32 %v3782_v50, %v1020_v44 }
 0x960   :  { %v3786_v56 = vpop.eup %3785  ;;  %v1025_v1 = vmul.f32 %v3784_v40, %v1021_v48 }
 0x961   :  { %v903_v5 = vmul.f32 %v3786_v56, %v4263_v62 }
 0x9c1   :  { %v1029_v51 = vpop.permute.xlu1 %1028 }
 0x9c2   :  { %v1031_v43 = vpop.permute.xlu0 %1030  ;;  %v1034_v54 = vmul.f32 %v3782_v50, %v1029_v51 }
 0x9c3   :  { %v1035_v55 = vmul.f32 %v3784_v40, %v1031_v43 }
 0x9c4   :  { %1038 = vrot.lane.b32.xlu0 %v1034_v54, %s3936_s6 }
 0x9c5   :  { %1040 = vrot.lane.b32.xlu1 %v1035_v55, %s3936_s6  ;;  %v906_v60 = vpop.permute.xlu1 %905 }
 0x9c6   :  { %v908_v61 = vmul.f32 %v3786_v56, %v906_v60 }
 0x9c8   :  { %910 = vrot.lane.b32.xlu0 %v908_v61, %s3936_s6 }
 0xa36   :  { %v1039_v0 = vpop.permute.xlu0 %1038 }
 0xa37   :  { %v4303_v2 = vadd.f32 %v1039_v0, %v1024_v63  ;;  %v1041_v4 = vpop.permute.xlu1 %1040 }
 0xa38   :  { %v4305_v52 = vadd.f32 %v1041_v4, %v1025_v1 }
 0xa39   :  { %3787 = vtanh.f32 %v4303_v2 }
 0xa3a   :  { %3789 = vtanh.f32 %v4305_v52  ;;  %v911_v6 = vpop.permute.xlu0 %910 }
 0xa3b   :  { %v4310_v8 = vadd.f32 %v911_v6, %v903_v5 }
 0xa3d   :  { %3791 = vtanh.f32 %v4310_v8 }
 0xa43   :  { %v3788_v58 = vpop.eup %3787 }
 0xa44   :  { %v3790_v59 = vpop.eup %3789  ;;  %1050 = vrot.lane.b32.xlu1 %v3788_v58, %s3936_s6  ;;  %v1270_v58 = vrot.slane %v4303_v2, 7 }
 0xa45   :  { %1052 = vrot.lane.b32.xlu0 %v3790_v59, %s3936_s6  ;;  %v1271_v59 = vrot.slane %v4305_v52, 7 }
 0xa47   :  { %v3792_v9 = vpop.eup %3791 }
 0xa48   :  { %916 = vrot.lane.b32.xlu1 %v3792_v9, %s3936_s6 }
 0xab6   :  { %v1051_v11 = vpop.permute.xlu1 %1050 }
 0xab7   :  { %v1053_v14 = vpop.permute.xlu0 %1052  ;;  %v1056_v15 = vmul.f32 %v3782_v50, %v1051_v11 }
 0xab8   :  { %v1057_v16 = vmul.f32 %v3784_v40, %v1053_v14 }
 0xab9   :  { %v1170_v19 = vrot.slane %v1056_v15, 3 }
 0xaba   :  { %v1060_v62 = vrot.slane %v1057_v16, 7  ;;  %v917_v18 = vpop.permute.xlu1 %916  ;;  %v1171_v20 = vrot.slane %v1057_v16, 2 }
 0xabb   :  { %v919_v22 = vmul.f32 %v3786_v56, %v917_v18 }
 0xabc   :  { %v1062_v23 = vsel %vm1061_vm10, %v1060_v62, %v1056_v15  ;;  %v1172_v25 = vsel %vm323_vm5, %v1171_v20, %v1170_v19 }
 0xabd   :  { %1063 = vrot.lane.b32.xlu0 %v1062_v23, %s3937_s7  ;;  %v1067_v24 = vrot.slane %v919_v22, 5 }
 0xabf   :  { %1068 = vrot.lane.b32.xlu1 %v1067_v24, %s3938_s0 }
 0xac1   :  { %1173 = vrot.lane.b32.xlu0 %v1172_v25, %s3937_s7 }
 0xb2f   :  { %v1064_v26 = vpop.permute.xlu0 %1063 }
 0xb31   :  { %v1069_v27 = vpop.permute.xlu1 %1068 }
 0xb32   :  { %v1071_v28 = vsel %vm192_vm6, %v1064_v26, %v1069_v27 }
 0xb33   :  { %v1174_v29 = vpop.permute.xlu0 %1173  ;;  %v1073_v30 = vrot.slane %v1071_v28, 3 }
 0xb34   :  { %3278 = vmatmul.mubr.msk.f32.vlgmr.msra.gmra.mrb[8].mxu0 %vm192_vm6, %v1174_v29 }
 0xb35   :  { %3577 = vmatpush3.bf16.msra.mxu0 %v4140_v47  ;;  %3296 = vmatprep.mubr.msk.f32.mxu0 %vm3934_vm4, %v3935_v10 }
 0xb36   :  { %3267 = vmatmul.mubr.msk.f32.vlgmr.msra.gmra.mrb[8].mxu1 %vm329_vm7, %v1073_v30  ;;  %3578 = vmatprep.subr.bf16.mxu0 %v3932_v3 }
 0xb37   :  { %3589 = vmatpush3.bf16.msra.mxu1 %v4078_v7  ;;  %3307 = vmatprep.mubr.msk.f32.mxu1 %vm3934_vm4, %v3935_v10 }
 0xb38   :  { %3590 = vmatprep.subr.bf16.mxu1 %v3932_v3 }
 0xb39   :  { %3580 = vmatpush3.bf16.msra.mxu0 %v4146_v49 }
 0xb3a   :  { %3581 = vmatprep.subr.bf16.mxu0 %v3932_v3 }
 0xb3b   :  { %3592 = vmatpush3.bf16.msra.mxu1 %v4096_v13 }
 0xb3c   :  { %3593 = vmatprep.subr.bf16.mxu1 %v3932_v3 }
 0xb3d   :  { %3583 = vmatpush3.bf16.msra.mxu0 %v4157_v53 }
 0xb3e   :  { %3584 = vmatprep.subr.bf16.mxu0 %v3932_v3 }
 0xb41   :  { %3586 = vmatpush3.bf16.msra.mxu0 %v4168_v57 }
 0xb42   :  { %3605 = vmatprep.subr.bf16.mxu0 %v3932_v3 }
 0xc07   :  { %v1243_v31 = vpop.f32.mrb[8].mxu0 }
 0xc08   :  { %v1248_v32 = vrot.slane %v1243_v31, 4  ;;  %v1249_v33 = vrot.slane %v1243_v31, 5  ;;  %v3279_v34 = vpop.f32.mrb[9].mxu0 }
 0xc09   :  { %v1142_v35 = vpop.f32.mrb[8].mxu1 }
 0xc0a   :  { %v1252_v36 = vadd.f32 %v1248_v32, %v4117_v21  ;;  %v1253_v37 = vadd.f32 %v1249_v33, %v4115_v17  ;;  %v3268_v38 = vpop.f32.mrb[9].mxu1  ;;  %v1143_v39 = vadd.f32 %v4199_v12, %v1142_v35 }
 0xc0c   :  { %3793 = vtanh.f32 %v1252_v36  ;;  %v2944_v46 = vmul.f32 -1.442695, %v1252_v36  ;;  %v2945_v50 = vmul.f32 -1.442695, %v1253_v37  ;;  %v2942_v51 = vmul.f32 -1.442695, %v1143_v39 }
 0xc0d   :  { %3795 = vtanh.f32 %v1253_v37 }
 0xc0e   :  { %3797 = vtanh.f32 %v1143_v39 }
 0xc0f   :  { %3799 = vpow2.f32 %v2944_v46 }
 0xc10   :  { %3801 = vpow2.f32 %v2945_v50 }
 0xc11   :  { %3803 = vpow2.f32 %v2942_v51 }
 0xc16   :  { %v3794_v41 = vpop.eup %3793 }
 0xc17   :  { %v3796_v42 = vpop.eup %3795  ;;  %1278 = vrot.lane.b32.xlu1 %v3794_v41, %s3936_s6 }
 0xc18   :  { %1280 = vrot.lane.b32.xlu0 %v3796_v42, %s3936_s6  ;;  %v3798_v45 = vpop.eup %3797 }
 0xc19   :  { %v3800_v40 = vpop.eup %3799 }
 0xc1a   :  { %v3802_v43 = vpop.eup %3801  ;;  %v1260_v54 = vadd.f32 1.0, %v3800_v40 }
 0xc1b   :  { %1155 = vrot.lane.b32.xlu1 %v3798_v45, %s3936_s6  ;;  %v1261_v55 = vadd.f32 1.0, %v3802_v43  ;;  %v3804_v56 = vpop.eup %3803 }
 0xc1c   :  { %3805 = vrcp.f32 %v1260_v54  ;;  %v1149_v60 = vadd.f32 1.0, %v3804_v56 }
 0xc1d   :  { %3807 = vrcp.f32 %v1261_v55 }
 0xc1e   :  { %3809 = vrcp.f32 %v1149_v60 }
 0xc26   :  { %v3806_v61 = vpop.eup %3805 }
 0xc27   :  { %v3808_v48 = vpop.eup %3807  ;;  %v1274_v9 = vmul.f32 %v3806_v61, %v1270_v58 }
 0xc28   :  { %v3810_v4 = vpop.eup %3809  ;;  %v1275_v11 = vmul.f32 %v3808_v48, %v1271_v59 }
 0xc29   :  { %v1153_v18 = vmul.f32 %v3810_v4, %v4310_v8 }
 0xc89   :  { %v1279_v44 = vpop.permute.xlu1 %1278 }
 0xc8a   :  { %v1281_v63 = vpop.permute.xlu0 %1280  ;;  %v1284_v0 = vmul.f32 %v3806_v61, %v1279_v44 }
 0xc8b   :  { %v1285_v1 = vmul.f32 %v3808_v48, %v1281_v63 }
 0xc8c   :  { %1288 = vrot.lane.b32.xlu0 %v1284_v0, %s3936_s6 }
 0xc8d   :  { %1290 = vrot.lane.b32.xlu1 %v1285_v1, %s3936_s6  ;;  %v1156_v5 = vpop.permute.xlu1 %1155 }
 0xc8e   :  { %v1158_v6 = vmul.f32 %v3810_v4, %v1156_v5 }
 0xc90   :  { %1160 = vrot.lane.b32.xlu0 %v1158_v6, %s3936_s6 }
 0xcfe   :  { %v1289_v14 = vpop.permute.xlu0 %1288 }
 0xcff   :  { %v1291_v15 = vpop.permute.xlu1 %1290  ;;  %v4350_v16 = vadd.f32 %v1289_v14, %v1274_v9 }
 0xd00   :  { %v4352_v62 = vadd.f32 %v1291_v15, %v1275_v11 }
 0xd01   :  { %3811 = vtanh.f32 %v4350_v16 }
 0xd02   :  { %3813 = vtanh.f32 %v4352_v62  ;;  %v1161_v19 = vpop.permute.xlu0 %1160 }
 0xd03   :  { %v4357_v20 = vadd.f32 %v1161_v19, %v1153_v18 }
 0xd05   :  { %3815 = vtanh.f32 %v4357_v20 }
 0xd0b   :  { %v3812_v2 = vpop.eup %3811 }
 0xd0c   :  { %v3814_v52 = vpop.eup %3813  ;;  %1300 = vrot.lane.b32.xlu1 %v3812_v2, %s3936_s6  ;;  %v1520_v2 = vrot.slane %v4350_v16, 7 }
 0xd0d   :  { %1302 = vrot.lane.b32.xlu0 %v3814_v52, %s3936_s6  ;;  %v1521_v52 = vrot.slane %v4352_v62, 7 }
 0xd0f   :  { %v3816_v22 = vpop.eup %3815 }
 0xd10   :  { %1166 = vrot.lane.b32.xlu1 %v3816_v22, %s3936_s6 }
 0xd7e   :  { %v1301_v23 = vpop.permute.xlu1 %1300 }
 0xd7f   :  { %v1303_v24 = vpop.permute.xlu0 %1302  ;;  %v1306_v26 = vmul.f32 %v3806_v61, %v1301_v23 }
 0xd80   :  { %v1307_v25 = vmul.f32 %v3808_v48, %v1303_v24 }
 0xd81   :  { %v1420_v29 = vrot.slane %v1306_v26, 4 }
 0xd82   :  { %v1310_v8 = vrot.slane %v1307_v25, 7  ;;  %v1167_v27 = vpop.permute.xlu1 %1166  ;;  %v1421_v28 = vrot.slane %v1307_v25, 3 }
 0xd83   :  { %v1169_v30 = vmul.f32 %v3810_v4, %v1167_v27 }
 0xd84   :  { %v1312_v31 = vsel %vm1311_vm11, %v1310_v8, %v1306_v26  ;;  %v1422_v33 = vsel %vm323_vm5, %v1421_v28, %v1420_v29 }
 0xd85   :  { %1313 = vrot.lane.b32.xlu0 %v1312_v31, %s3937_s7  ;;  %v1317_v32 = vrot.slane %v1169_v30, 4 }
 0xd87   :  { %1318 = vrot.lane.b32.xlu1 %v1317_v32, %s3938_s0 }
 0xd89   :  { %1423 = vrot.lane.b32.xlu0 %v1422_v33, %s3937_s7 }
 0xdf7   :  { %v1314_v34 = vpop.permute.xlu0 %1313 }
 0xdf9   :  { %v1319_v35 = vpop.permute.xlu1 %1318 }
 0xdfa   :  { %v1321_v36 = vsel %vm192_vm6, %v1314_v34, %v1319_v35 }
 0xdfb   :  { %v1424_v37 = vpop.permute.xlu0 %1423  ;;  %v1323_v38 = vrot.slane %v1321_v36, 4 }
 0xdfc   :  { %3308 = vmatmul.mubr.msk.f32.vlgmr.msra.gmra.mrb[10].mxu1 %vm192_vm6, %v1424_v37 }
 0xdfd   :  { %3595 = vmatpush3.bf16.msra.mxu1 %v4140_v47  ;;  %3326 = vmatprep.mubr.msk.f32.mxu1 %vm3934_vm4, %v3935_v10 }
 0xdfe   :  { %3297 = vmatmul.mubr.msk.f32.vlgmr.msra.gmra.mrb[10].mxu0 %vm329_vm7, %v1323_v38  ;;  %3596 = vmatprep.subr.bf16.mxu1 %v3932_v3 }
 0xdff   :  { %3607 = vmatpush3.bf16.msra.mxu0 %v4078_v7  ;;  %3337 = vmatprep.mubr.msk.f32.mxu0 %vm3934_vm4, %v3935_v10 }
 0xe00   :  { %3608 = vmatprep.subr.bf16.mxu0 %v3932_v3 }
 0xe01   :  { %3598 = vmatpush3.bf16.msra.mxu1 %v4146_v49 }
 0xe02   :  { %3599 = vmatprep.subr.bf16.mxu1 %v3932_v3 }
 0xe03   :  { %3610 = vmatpush3.bf16.msra.mxu0 %v4096_v13 }
 0xe04   :  { %3611 = vmatprep.subr.bf16.mxu0 %v3932_v3 }
 0xe05   :  { %3601 = vmatpush3.bf16.msra.mxu1 %v4157_v53 }
 0xe06   :  { %3602 = vmatprep.subr.bf16.mxu1 %v3932_v3 }
 0xe09   :  { %3604 = vmatpush3.bf16.msra.mxu1 %v4168_v57 }
 0xe0a   :  { %3623 = vmatprep.subr.bf16.mxu1 %v3932_v3 }
 0xecf   :  { %v1493_v39 = vpop.f32.mrb[10].mxu1 }
 0xed0   :  { %v1498_v41 = vrot.slane %v1493_v39, 3  ;;  %v1499_v42 = vrot.slane %v1493_v39, 4  ;;  %v3309_v45 = vpop.f32.mrb[11].mxu1 }
 0xed1   :  { %v1392_v46 = vpop.f32.mrb[10].mxu0 }
 0xed2   :  { %v1502_v50 = vadd.f32 %v1498_v41, %v4117_v21  ;;  %v1503_v51 = vadd.f32 %v1499_v42, %v4115_v17  ;;  %v3298_v40 = vpop.f32.mrb[11].mxu0  ;;  %v1393_v43 = vadd.f32 %v4199_v12, %v1392_v46 }
 0xed4   :  { %3817 = vtanh.f32 %v1502_v50  ;;  %v2949_v60 = vmul.f32 -1.442695, %v1502_v50  ;;  %v2950_v61 = vmul.f32 -1.442695, %v1503_v51  ;;  %v2947_v44 = vmul.f32 -1.442695, %v1393_v43 }
 0xed5   :  { %3819 = vtanh.f32 %v1503_v51 }
 0xed6   :  { %3821 = vtanh.f32 %v1393_v43 }
 0xed7   :  { %3823 = vpow2.f32 %v2949_v60 }
 0xed8   :  { %3825 = vpow2.f32 %v2950_v61 }
 0xed9   :  { %3827 = vpow2.f32 %v2947_v44 }
 0xede   :  { %v3818_v54 = vpop.eup %3817 }
 0xedf   :  { %v3820_v55 = vpop.eup %3819  ;;  %1528 = vrot.lane.b32.xlu1 %v3818_v54, %s3936_s6 }
 0xee0   :  { %1530 = vrot.lane.b32.xlu0 %v3820_v55, %s3936_s6  ;;  %v3822_v56 = vpop.eup %3821 }
 0xee1   :  { %v3824_v48 = vpop.eup %3823 }
 0xee2   :  { %v3826_v63 = vpop.eup %3825  ;;  %v1510_v0 = vadd.f32 1.0, %v3824_v48 }
 0xee3   :  { %1405 = vrot.lane.b32.xlu1 %v3822_v56, %s3936_s6  ;;  %v1511_v1 = vadd.f32 1.0, %v3826_v63  ;;  %v3828_v4 = vpop.eup %3827 }
 0xee4   :  { %3829 = vrcp.f32 %v1510_v0  ;;  %v1399_v5 = vadd.f32 1.0, %v3828_v4 }
 0xee5   :  { %3831 = vrcp.f32 %v1511_v1 }
 0xee6   :  { %3833 = vrcp.f32 %v1399_v5 }
 0xeee   :  { %v3830_v6 = vpop.eup %3829 }
 0xeef   :  { %v3832_v59 = vpop.eup %3831  ;;  %v1524_v22 = vmul.f32 %v3830_v6, %v1520_v2 }
 0xef0   :  { %v3834_v15 = vpop.eup %3833  ;;  %v1525_v24 = vmul.f32 %v3832_v59, %v1521_v52 }
 0xef1   :  { %v1403_v27 = vmul.f32 %v3834_v15, %v4357_v20 }
 0xf51   :  { %v1529_v58 = vpop.permute.xlu1 %1528 }
 0xf52   :  { %v1531_v9 = vpop.permute.xlu0 %1530  ;;  %v1534_v11 = vmul.f32 %v3830_v6, %v1529_v58 }
 0xf53   :  { %v1535_v14 = vmul.f32 %v3832_v59, %v1531_v9 }
 0xf54   :  { %1538 = vrot.lane.b32.xlu0 %v1534_v11, %s3936_s6 }
 0xf55   :  { %1540 = vrot.lane.b32.xlu1 %v1535_v14, %s3936_s6  ;;  %v1406_v18 = vpop.permute.xlu1 %1405 }
 0xf56   :  { %v1408_v19 = vmul.f32 %v3834_v15, %v1406_v18 }
 0xf58   :  { %1410 = vrot.lane.b32.xlu0 %v1408_v19, %s3936_s6 }
 0xfc6   :  { %v1539_v23 = vpop.permute.xlu0 %1538 }
 0xfc7   :  { %v4397_v25 = vadd.f32 %v1539_v23, %v1524_v22  ;;  %v1541_v26 = vpop.permute.xlu1 %1540 }
 0xfc8   :  { %v4399_v8 = vadd.f32 %v1541_v26, %v1525_v24 }
 0xfc9   :  { %3835 = vtanh.f32 %v4397_v25 }
 0xfca   :  { %3837 = vtanh.f32 %v4399_v8  ;;  %v1411_v28 = vpop.permute.xlu0 %1410  ;;  %v1771_v26 = vrot.slane %v4399_v8, 7 }
 0xfcb   :  { %v4404_v29 = vadd.f32 %v1411_v28, %v1403_v27 }
 0xfcd   :  { %3839 = vtanh.f32 %v4404_v29 }
 0xfd3   :  { %v3836_v16 = vpop.eup %3835 }
 0xfd4   :  { %v3838_v62 = vpop.eup %3837  ;;  %1550 = vrot.lane.b32.xlu1 %v3836_v16, %s3936_s6  ;;  %v1770_v16 = vrot.slane %v4397_v25, 7 }
 0xfd5   :  { %1552 = vrot.lane.b32.xlu0 %v3838_v62, %s3936_s6 }
 0xfd7   :  { %v3840_v30 = vpop.eup %3839 }
 0xfd8   :  { %1416 = vrot.lane.b32.xlu1 %v3840_v30, %s3936_s6 }
0x1046   :  { %v1551_v31 = vpop.permute.xlu1 %1550 }
0x1047   :  { %v1553_v32 = vpop.permute.xlu0 %1552  ;;  %v1556_v33 = vmul.f32 %v3830_v6, %v1551_v31 }
0x1048   :  { %v1557_v34 = vmul.f32 %v3832_v59, %v1553_v32 }
0x1049   :  { %v1670_v36 = vrot.slane %v1556_v33, 5 }
0x104a   :  { %v1560_v20 = vrot.slane %v1557_v34, 7  ;;  %v1417_v35 = vpop.permute.xlu1 %1416  ;;  %v1671_v37 = vrot.slane %v1557_v34, 4 }
0x104b   :  { %v1419_v38 = vmul.f32 %v3834_v15, %v1417_v35 }
0x104c   :  { %v1562_v39 = vsel %vm1561_vm12, %v1560_v20, %v1556_v33  ;;  %v1672_v42 = vsel %vm323_vm5, %v1671_v37, %v1670_v36 }
0x104d   :  { %1563 = vrot.lane.b32.xlu0 %v1562_v39, %s3937_s7  ;;  %v1567_v41 = vrot.slane %v1419_v38, 3 }
0x104f   :  { %1568 = vrot.lane.b32.xlu1 %v1567_v41, %s3938_s0 }
0x1051   :  { %1673 = vrot.lane.b32.xlu0 %v1672_v42, %s3937_s7 }
0x10bf   :  { %v1564_v45 = vpop.permute.xlu0 %1563 }
0x10c1   :  { %v1569_v46 = vpop.permute.xlu1 %1568 }
0x10c2   :  { %v1571_v50 = vsel %vm192_vm6, %v1564_v45, %v1569_v46 }
0x10c3   :  { %v1674_v51 = vpop.permute.xlu0 %1673  ;;  %v1573_v40 = vrot.slane %v1571_v50, 5 }
0x10c4   :  { %3338 = vmatmul.mubr.msk.f32.vlgmr.msra.gmra.mrb[12].mxu0 %vm192_vm6, %v1674_v51 }
0x10c5   :  { %3613 = vmatpush3.bf16.msra.mxu0 %v4140_v47  ;;  %3356 = vmatprep.mubr.msk.f32.mxu0 %vm3934_vm4, %v3935_v10 }
0x10c6   :  { %3327 = vmatmul.mubr.msk.f32.vlgmr.msra.gmra.mrb[12].mxu1 %vm329_vm7, %v1573_v40  ;;  %3614 = vmatprep.subr.bf16.mxu0 %v3932_v3 }
0x10c7   :  { %3625 = vmatpush3.bf16.msra.mxu1 %v4078_v7  ;;  %3367 = vmatprep.mubr.msk.f32.mxu1 %vm3934_vm4, %v3935_v10 }
0x10c8   :  { %3626 = vmatprep.subr.bf16.mxu1 %v3932_v3 }
0x10c9   :  { %3616 = vmatpush3.bf16.msra.mxu0 %v4146_v49 }
0x10ca   :  { %3617 = vmatprep.subr.bf16.mxu0 %v3932_v3 }
0x10cb   :  { %3628 = vmatpush3.bf16.msra.mxu1 %v4096_v13 }
0x10cc   :  { %3629 = vmatprep.subr.bf16.mxu1 %v3932_v3 }
0x10cd   :  { %3619 = vmatpush3.bf16.msra.mxu0 %v4157_v53 }
0x10ce   :  { %3620 = vmatprep.subr.bf16.mxu0 %v3932_v3 }
0x10d1   :  { %3622 = vmatpush3.bf16.msra.mxu0 %v4168_v57 }
0x10d2   :  { %3641 = vmatprep.subr.bf16.mxu0 %v3932_v3 }
0x1197   :  { %v1743_v7 = vpop.f32.mrb[12].mxu0 }
0x1198   :  { %v1748_v43 = vrot.slane %v1743_v7, 2  ;;  %v1749_v54 = vrot.slane %v1743_v7, 3  ;;  %v3339_v55 = vpop.f32.mrb[13].mxu0 }
0x1199   :  { %v1642_v56 = vpop.f32.mrb[12].mxu1 }
0x119a   :  { %v1753_v60 = vadd.f32 %v1749_v54, %v4115_v17  ;;  %v3328_v61 = vpop.f32.mrb[13].mxu1  ;;  %v1752_v13 = vadd.f32 %v1748_v43, %v4117_v21  ;;  %v1643_v44 = vadd.f32 %v4199_v12, %v1642_v56 }
0x119c   :  { %3841 = vtanh.f32 %v1753_v60  ;;  %v2955_v1 = vmul.f32 -1.442695, %v1753_v60  ;;  %v2954_v4 = vmul.f32 -1.442695, %v1752_v13  ;;  %v2952_v5 = vmul.f32 -1.442695, %v1643_v44 }
0x119d   :  { %3843 = vtanh.f32 %v1752_v13 }
0x119e   :  { %3845 = vtanh.f32 %v1643_v44 }
0x119f   :  { %3847 = vpow2.f32 %v2955_v1 }
0x11a0   :  { %3849 = vpow2.f32 %v2954_v4 }
0x11a1   :  { %3851 = vpow2.f32 %v2952_v5 }
0x11a6   :  { %v3842_v48 = vpop.eup %3841 }
0x11a7   :  { %1780 = vrot.lane.b32.xlu1 %v3842_v48, %s3936_s6  ;;  %v3844_v63 = vpop.eup %3843 }
0x11a8   :  { %v3846_v0 = vpop.eup %3845 }
0x11a9   :  { %1655 = vrot.lane.b32.xlu0 %v3846_v0, %s3936_s6  ;;  %v3848_v6 = vpop.eup %3847 }
0x11aa   :  { %v3850_v58 = vpop.eup %3849  ;;  %v1761_v12 = vadd.f32 1.0, %v3848_v6 }
0x11ab   :  { %1778 = vrot.lane.b32.xlu1 %v3844_v63, %s3936_s6  ;;  %v3852_v59 = vpop.eup %3851  ;;  %v1760_v9 = vadd.f32 1.0, %v3850_v58 }
0x11ac   :  { %3853 = vrcp.f32 %v1761_v12  ;;  %v1649_v11 = vadd.f32 1.0, %v3852_v59 }
0x11ad   :  { %3855 = vrcp.f32 %v1760_v9 }
0x11ae   :  { %3857 = vrcp.f32 %v1649_v11 }
0x11b6   :  { %v3854_v14 = vpop.eup %3853 }
0x11b7   :  { %v3856_v19 = vpop.eup %3855  ;;  %v1775_v27 = vmul.f32 %v3854_v14, %v1771_v26 }
0x11b8   :  { %v3858_v2 = vpop.eup %3857  ;;  %v1774_v31 = vmul.f32 %v3856_v19, %v1770_v16 }
0x11b9   :  { %v1653_v30 = vmul.f32 %v3858_v2, %v4404_v29 }
0x1219   :  { %v1781_v15 = vpop.permute.xlu1 %1780 }
0x121a   :  { %v1785_v18 = vmul.f32 %v3854_v14, %v1781_v15 }
0x121b   :  { %v1656_v52 = vpop.permute.xlu0 %1655 }
0x121c   :  { %1790 = vrot.lane.b32.xlu0 %v1785_v18, %s3936_s6  ;;  %v1658_v23 = vmul.f32 %v3858_v2, %v1656_v52 }
0x121d   :  { %v1779_v22 = vpop.permute.xlu1 %1778 }
0x121e   :  { %v1784_v24 = vmul.f32 %v3856_v19, %v1779_v22  ;;  %1660 = vrot.lane.b32.xlu1 %v1658_v23, %s3936_s6 }
0x1220   :  { %1788 = vrot.lane.b32.xlu0 %v1784_v24, %s3936_s6 }
0x128e   :  { %v1791_v28 = vpop.permute.xlu0 %1790 }
0x128f   :  { %v4444_v62 = vadd.f32 %v1791_v28, %v1775_v27 }
0x1290   :  { %v1661_v32 = vpop.permute.xlu1 %1660 }
0x1291   :  { %3859 = vtanh.f32 %v4444_v62  ;;  %v4448_v34 = vadd.f32 %v1661_v32, %v1653_v30  ;;  %v2021_v28 = vrot.slane %v4444_v62, 7 }
0x1292   :  { %v1789_v33 = vpop.permute.xlu0 %1788 }
0x1293   :  { %v4450_v20 = vadd.f32 %v1789_v33, %v1774_v31  ;;  %3861 = vtanh.f32 %v4448_v34 }
0x1295   :  { %3863 = vtanh.f32 %v4450_v20  ;;  %v2020_v16 = vrot.slane %v4450_v20, 7 }
0x129b   :  { %v3860_v8 = vpop.eup %3859 }
0x129c   :  { %1802 = vrot.lane.b32.xlu1 %v3860_v8, %s3936_s6 }
0x129d   :  { %v3862_v25 = vpop.eup %3861 }
0x129e   :  { %1666 = vrot.lane.b32.xlu0 %v3862_v25, %s3936_s6 }
0x129f   :  { %v3864_v35 = vpop.eup %3863 }
0x12a0   :  { %1800 = vrot.lane.b32.xlu1 %v3864_v35, %s3936_s6 }
0x130e   :  { %v1803_v29 = vpop.permute.xlu1 %1802 }
0x130f   :  { %v1807_v36 = vmul.f32 %v3854_v14, %v1803_v29 }
0x1310   :  { %v1667_v37 = vpop.permute.xlu0 %1666 }
0x1311   :  { %v1669_v38 = vmul.f32 %v3858_v2, %v1667_v37  ;;  %v1810_v41 = vrot.slane %v1807_v36, 7  ;;  %v1921_v51 = vrot.slane %v1807_v36, 5 }
0x1312   :  { %v1801_v39 = vpop.permute.xlu1 %1800 }
0x1313   :  { %v1806_v42 = vmul.f32 %v3856_v19, %v1801_v39  ;;  %v1817_v45 = vrot.slane %v1669_v38, 2 }
0x1315   :  { %v1920_v46 = vrot.slane %v1806_v42, 6  ;;  %v1812_v50 = vsel %vm1811_vm13, %v1810_v41, %v1806_v42  ;;  %1818 = vrot.lane.b32.xlu1 %v1817_v45, %s3938_s0 }
0x1316   :  { %1813 = vrot.lane.b32.xlu0 %v1812_v50, %s3937_s7 }
0x1317   :  { %v1922_v40 = vsel %vm323_vm5, %v1921_v51, %v1920_v46 }
0x131a   :  { %1923 = vrot.lane.b32.xlu0 %v1922_v40, %s3937_s7 }
0x1387   :  { %v1819_v7 = vpop.permute.xlu1 %1818 }
0x1388   :  { %v1814_v43 = vpop.permute.xlu0 %1813 }
0x1389   :  { %v1821_v54 = vsel %vm192_vm6, %v1814_v43, %v1819_v7 }
0x138a   :  { %v1823_v55 = vrot.slane %v1821_v54, 6 }
0x138c   :  { %v1924_v56 = vpop.permute.xlu0 %1923  ;;  %3357 = vmatmul.mubr.msk.f32.vlgmr.msra.gmra.mrb[14].mxu0 %vm329_vm7, %v1823_v55 }
0x138d   :  { %3368 = vmatmul.mubr.msk.f32.vlgmr.msra.gmra.mrb[14].mxu1 %vm192_vm6, %v1924_v56  ;;  %3397 = vmatprep.mubr.msk.f32.mxu0 %vm3934_vm4, %v3935_v10 }
0x138e   :  { %3631 = vmatpush3.bf16.msra.mxu1 %v4140_v47  ;;  %3386 = vmatprep.mubr.msk.f32.mxu1 %vm3934_vm4, %v3935_v10  ;;  %v4479_v47 = vld [vmem:[%s4754_s3] ss:$0 sm:$0xff] }
0x138f   :  { %3632 = vmatprep.subr.bf16.mxu1 %v3932_v3 }
0x1392   :  { %3634 = vmatpush3.bf16.msra.mxu1 %v4146_v49 }
0x1393   :  { %3635 = vmatprep.subr.bf16.mxu1 %v3932_v3 }
0x1396   :  { %3637 = vmatpush3.bf16.msra.mxu1 %v4157_v53 }
0x1397   :  { %3638 = vmatprep.subr.bf16.mxu1 %v3932_v3 }
0x139a   :  { %3640 = vmatpush3.bf16.msra.mxu1 %v4168_v57 }
0x139b   :  { %3671 = vmatprep.subr.bf16.mxu1 %v3932_v3 }
0x145f   :  { %v1892_v60 = vpop.f32.mrb[14].mxu0 }
0x1460   :  { %v1893_v61 = vadd.f32 %v4479_v47, %v1892_v60  ;;  %v3358_v13 = vpop.f32.mrb[15].mxu0  ;;  %v1993_v49 = vpop.f32.mrb[14].mxu1 }
0x1461   :  { %v1998_v44 = vrot.slane %v1993_v49, 1  ;;  %v1999_v48 = vrot.slane %v1993_v49, 2  ;;  %v3369_v63 = vpop.f32.mrb[15].mxu1 }
0x1462   :  { %3865 = vtanh.f32 %v1893_v61  ;;  %v2957_v5 = vmul.f32 -1.442695, %v1893_v61 }
0x1463   :  { %v2002_v53 = vadd.f32 %v1998_v44, %v4117_v21  ;;  %v2003_v57 = vadd.f32 %v1999_v48, %v4115_v17 }
0x1465   :  { %3867 = vtanh.f32 %v2002_v53  ;;  %v2959_v6 = vmul.f32 -1.442695, %v2002_v53  ;;  %v2960_v58 = vmul.f32 -1.442695, %v2003_v57 }
0x1466   :  { %3869 = vtanh.f32 %v2003_v57 }
0x1467   :  { %3871 = vpow2.f32 %v2957_v5  ;;  %v2177_v5 = vld [vmem:[%s4719_s8 + $0x8] sm:$0xff] }
0x1468   :  { %3873 = vpow2.f32 %v2959_v6  ;;  %v2178_v6 = vld [vmem:[%s4719_s8 + $0x10] sm:$0xff] }
0x1469   :  { %3875 = vpow2.f32 %v2960_v58 }
0x146c   :  { %v3866_v0 = vpop.eup %3865 }
0x146d   :  { %1905 = vrot.lane.b32.xlu1 %v3866_v0, %s3936_s6 }
0x146f   :  { %v3868_v1 = vpop.eup %3867 }
0x1470   :  { %v3870_v4 = vpop.eup %3869 }
0x1471   :  { %2030 = vrot.lane.b32.xlu0 %v3870_v4, %s3936_s6  ;;  %2028 = vrot.lane.b32.xlu1 %v3868_v1, %s3936_s6  ;;  %v3872_v21 = vpop.eup %3871 }
0x1472   :  { %v3874_v12 = vpop.eup %3873  ;;  %v1899_v17 = vadd.f32 1.0, %v3872_v21  ;;  %v2179_v21 = vld [vmem:[%s4719_s8 + $0x18] sm:$0xff] }
0x1473   :  { %v3876_v59 = vpop.eup %3875  ;;  %v2010_v9 = vadd.f32 1.0, %v3874_v12  ;;  %v3645_v12 = vpack.c.bf16 %v2179_v21, %v2178_v6  ;;  %v2727_v6 = vld [vmem:[%s4729_s18 + $0x8] sm:$0xff]  ;;  %v2728_v21 = vld [vmem:[%s4729_s18 + $0x10] sm:$0xff] }
0x1474   :  { %3877 = vrcp.f32 %v1899_v17  ;;  %v2011_v11 = vadd.f32 1.0, %v3876_v59 }
0x1475   :  { %3879 = vrcp.f32 %v2010_v9 }
0x1476   :  { %3881 = vrcp.f32 %v2011_v11  ;;  %v2265_v11 = vld [vmem:[%s4721_s10] sm:$0xff] }
0x147e   :  { %v3878_v14 = vpop.eup %3877 }
0x147f   :  { %v3880_v19 = vpop.eup %3879  ;;  %v1903_v26 = vmul.f32 %v3878_v14, %v4448_v34 }
0x1480   :  { %v3882_v2 = vpop.eup %3881  ;;  %v2024_v32 = vmul.f32 %v3880_v19, %v2020_v16  ;;  %v2273_v16 = vld [vmem:[%s4721_s10 + $0x40] sm:$0xff] }
0x1481   :  { %v2025_v31 = vmul.f32 %v3882_v2, %v2021_v28 }
0x14df   :  { %v1906_v15 = vpop.permute.xlu1 %1905 }
0x14e0   :  { %v1908_v18 = vmul.f32 %v3878_v14, %v1906_v15 }
0x14e2   :  { %1910 = vrot.lane.b32.xlu0 %v1908_v18, %s3936_s6  ;;  %v2267_v18 = vld [vmem:[%s4721_s10 + $0x10] sm:$0xff] }
0x14e3   :  { %v2031_v52 = vpop.permute.xlu0 %2030  ;;  %v2029_v22 = vpop.permute.xlu1 %2028 }
0x14e4   :  { %v2035_v23 = vmul.f32 %v3882_v2, %v2031_v52  ;;  %v2034_v24 = vmul.f32 %v3880_v19, %v2029_v22  ;;  %v2269_v22 = vld [vmem:[%s4721_s10 + $0x20] sm:$0xff] }
0x14e6   :  { %2040 = vrot.lane.b32.xlu1 %v2035_v23, %s3936_s6  ;;  %2038 = vrot.lane.b32.xlu0 %v2034_v24, %s3936_s6  ;;  %v2270_v23 = vld [vmem:[%s4721_s10 + $0x28] sm:$0xff] }
0x14e7   :  { %v3654_v24 = vpack.c.bf16 %v2270_v23, %v2269_v22 }
0x1554   :  { %v1911_v27 = vpop.permute.xlu0 %1910 }
0x1555   :  { %v1913_v30 = vadd.f32 %v1911_v27, %v1903_v26  ;;  %v2271_v26 = vld [vmem:[%s4721_s10 + $0x30] sm:$0xff]  ;;  %v2272_v27 = vld [vmem:[%s4721_s10 + $0x38] sm:$0xff] }
0x1556   :  { %v3657_v28 = vpack.c.bf16 %v2272_v27, %v2271_v26 }
0x1557   :  { %3883 = vtanh.f32 %v1913_v30 }
0x1558   :  { %v2041_v33 = vpop.permute.xlu1 %2040  ;;  %v2039_v8 = vpop.permute.xlu0 %2038 }
0x1559   :  { %v2045_v25 = vadd.f32 %v2041_v33, %v2025_v31  ;;  %v2044_v35 = vadd.f32 %v2039_v8, %v2024_v32  ;;  %v2275_v32 = vld [vmem:[%s4721_s10 + $0x50] sm:$0xff]  ;;  %v2276_v33 = vld [vmem:[%s4721_s10 + $0x58] sm:$0xff] }
0x155a   :  { %v3663_v8 = vpack.c.bf16 %v2276_v33, %v2275_v32 }
0x155b   :  { %3885 = vtanh.f32 %v2045_v25  ;;  %v2277_v25 = vld [vmem:[%s4721_s10 + $0x60] sm:$0xff] }
0x155c   :  { %3887 = vtanh.f32 %v2044_v35  ;;  %v2278_v35 = vld [vmem:[%s4721_s10 + $0x68] sm:$0xff] }
0x1561   :  { %v3884_v29 = vpop.eup %3883 }
0x1562   :  { %1916 = vrot.lane.b32.xlu1 %v3884_v29, %s3936_s6  ;;  %v3666_v29 = vpack.c.bf16 %v2278_v35, %v2277_v25 }
0x1565   :  { %v3886_v36 = vpop.eup %3885 }
0x1566   :  { %v3888_v34 = vpop.eup %3887  ;;  %2052 = vrot.lane.b32.xlu0 %v3886_v36, %s3936_s6  ;;  %v2279_v36 = vld [vmem:[%s4721_s10 + $0x70] sm:$0xff] }
0x1567   :  { %2050 = vrot.lane.b32.xlu1 %v3888_v34, %s3936_s6  ;;  %v2280_v34 = vld [vmem:[%s4721_s10 + $0x78] sm:$0xff] }
0x15d4   :  { %v1917_v62 = vpop.permute.xlu1 %1916 }
0x15d5   :  { %v1919_v39 = vmul.f32 %v3878_v14, %v1917_v62  ;;  %v2266_v14 = vld [vmem:[%s4721_s10 + $0x8] sm:$0xff]  ;;  %v3669_v62 = vpack.c.bf16 %v2280_v34, %v2279_v36 }
0x15d6   :  { %v3648_v15 = vpack.c.bf16 %v2266_v14, %v2265_v11  ;;  %v2731_v11 = vld [vmem:[%s4729_s18 + $0x28] sm:$0xff] }
0x15d7   :  { %v2068_v45 = vrot.slane %v1919_v39, 1  ;;  %v2963_v39 = vld [vmem:[%s4720_s9] ss:$0 sm:$0xff] }
0x15d8   :  { %v2053_v20 = vpop.permute.xlu0 %2052 }
0x15d9   :  { %v2057_v37 = vmul.f32 %v3882_v2, %v2053_v20  ;;  %v2051_v38 = vpop.permute.xlu1 %2050  ;;  %v2361_v20 = vld [vmem:[%s4723_s12] sm:$0xff] }
0x15da   :  { %v2056_v41 = vmul.f32 %v3880_v19, %v2051_v38  ;;  %v2268_v19 = vld [vmem:[%s4721_s10 + $0x18] sm:$0xff] }
0x15db   :  { %v2060_v42 = vrot.slane %v2057_v37, 7  ;;  %v3651_v52 = vpack.c.bf16 %v2268_v19, %v2267_v18  ;;  %v2362_v37 = vld [vmem:[%s4723_s12 + $0x8] sm:$0xff]  ;;  %v2733_v18 = vld [vmem:[%s4729_s18 + $0x38] sm:$0xff] }
0x15dc   :  { %2061 = vrot.lane.b32.xlu0 %v2056_v41, %s3937_s7  ;;  %v3672_v38 = vpack.c.bf16 %v2362_v37, %v2361_v20  ;;  %v2817_v20 = vld [vmem:[%s4731_s20] sm:$0xff] }
0x15dd   :  { %2063 = vrot.lane.b32.xlu1 %v2060_v42, %s3937_s7 }
0x15e0   :  { %2069 = vrot.lane.b32.xlu0 %v2068_v45, %s3938_s0 }
0x164e   :  { %v2062_v46 = vpop.permute.xlu0 %2061 }
0x164f   :  { %v2064_v50 = vpop.permute.xlu1 %2063 }
0x1652   :  { %v2070_v51 = vpop.permute.xlu0 %2069 }
0x1653   :  { %v2072_v40 = vsel %vm192_vm6, %v2062_v46, %v2070_v51  ;;  %v2073_v7 = vsel %vm192_vm6, %v2064_v50, %v2070_v51  ;;  %v2363_v51 = vld [vmem:[%s4723_s12 + $0x10] sm:$0xff] }
0x1654   :  { %v2077_v43 = vrot.slane %v2072_v40, 7  ;;  %v2078_v54 = vrot.slane %v2073_v7, 7  ;;  %v2364_v40 = vld [vmem:[%s4723_s12 + $0x18] sm:$0xff] }
0x1655   :  { %v3675_v7 = vpack.c.bf16 %v2364_v40, %v2363_v51 }
0x1656   :  { %v2079_v55 = vsel %vm2076_vm14, %v2077_v43, %v2078_v54  ;;  %v2487_v43 = vld [vmem:[%s4726_s15] sm:$0xf]  ;;  %s3939_s15 = smov 4  }
0x1657   :  { %3387 = vmatmul.mubr.msk.f32.vlgmr.msra.gmra.mrb[16].mxu1 %vm329_vm7, %v2079_v55  ;;  %v2486_v54 = vld [vmem:[%s4755_s25] sm:$0x3] }
0x1658   :  { %3443 = vmatprep.mubr.msk.f32.mxu1 %vm3934_vm4, %v3935_v10  ;;  %3673 = vmatpush3.bf16.msra.mxu1 %v3672_v38  ;;  %v2458_v55 = vld [vmem:[%s4755_s25] sm:$0x3] }
0x1659   :  { %3674 = vmatprep.subr.bf16.mxu1 %v3932_v3 }
0x165c   :  { %3676 = vmatpush3.bf16.msra.mxu1 %v3675_v7 }
0x165d   :  { %3677 = vmatprep.subr.bf16.mxu1 %v3932_v3 }
0x172a   :  { %v2148_v56 = vpop.f32.mrb[16].mxu1 }
0x172b   :  { %v2149_v60 = vadd.f32 %v4479_v47, %v2148_v56  ;;  %v3388_v61 = vpop.f32.mrb[17].mxu1  ;;  %v2176_v47 = vld [vmem:[%s4719_s8] sm:$0xff] }
0x172c   :  { %v3642_v58 = vpack.c.bf16 %v2177_v5, %v2176_v47  ;;  %v2965_v56 = vld [vmem:[%s4722_s11] ss:$0 sm:$0xff] }
0x172d   :  { %3889 = vtanh.f32 %v2149_v60  ;;  %v2962_v49 = vmul.f32 -1.442695, %v2149_v60  ;;  %v2482_v61 = vld [vmem:[%s4725_s14] sm:$0xff] }
0x172e   :  { %3643 = vmatpush3.bf16.msra.mxu0 %v3642_v58  ;;  %v2636_v47 = vld [vmem:[%s4756_s30] sm:$0x3]  ;;  %s2907_s30 = sshll.u32 %s3941_s4, 4  ;;  %s2908_s30 = int_to_ptr.vmem [resolvable:$true] %s2907_s30 }
0x172f   :  { %3891 = vpow2.f32 %v2962_v49  ;;  %3644 = vmatprep.subr.bf16.mxu0 %v3932_v3  ;;  %v2726_v5 = vld [vmem:[%s4729_s18] sm:$0xff]  ;;  %p3913_p1 = scmp.lt.s32.totalorder %s2908_s30, %s2908_s30 }
0x1730   :  { %v3684_v58 = vpack.c.bf16 %v2727_v6, %v2726_v5 }
0x1732   :  { %3646 = vmatpush3.bf16.msra.mxu0 %v3645_v12 }
0x1733   :  { %3647 = vmatprep.subr.bf16.mxu0 %v3932_v3 }
0x1737   :  { %v3890_v13 = vpop.eup %3889 }
0x1738   :  { %2161 = vrot.lane.b32.xlu1 %v3890_v13, %s3936_s6  ;;  %v2483_v13 = vld [vmem:[%s4725_s14 + $0x8] sm:$0xff] }
0x1739   :  { %v3892_v44 = vpop.eup %3891 }
0x173a   :  { %v2155_v48 = vadd.f32 1.0, %v3892_v44 }
0x173c   :  { %3893 = vrcp.f32 %v2155_v48 }
0x1746   :  { %v3894_v63 = vpop.eup %3893 }
0x1747   :  { %v2159_v0 = vmul.f32 %v3894_v63, %v1913_v30  ;;  %v2274_v30 = vld [vmem:[%s4721_s10 + $0x48] sm:$0xff] }
0x1748   :  { %v3660_v31 = vpack.c.bf16 %v2274_v30, %v2273_v16  ;;  %v2974_v16 = vld [vmem:[%s4728_s17] ss:$0 sm:$0xff] }
0x17aa   :  { %v2162_v53 = vpop.permute.xlu1 %2161 }
0x17ab   :  { %v2164_v57 = vmul.f32 %v3894_v63, %v2162_v53  ;;  %v2484_v53 = vld [vmem:[%s4725_s14 + $0x10] sm:$0xff] }
0x17ad   :  { %2166 = vrot.lane.b32.xlu0 %v2164_v57, %s3936_s6  ;;  %v2485_v57 = vld [vmem:[%s4725_s14 + $0x18] sm:$0xff] }
0x181f   :  { %v2167_v1 = vpop.permute.xlu0 %2166 }
0x1820   :  { %v2169_v4 = vadd.f32 %v2167_v1, %v2159_v0  ;;  %v3681_v1 = vpack.c.bf16 %v2485_v57, %v2484_v53 }
0x1822   :  { %3895 = vtanh.f32 %v2169_v4  ;;  %v2637_v4 = vld [vmem:[%s4727_s16] sm:$0xf]  ;;  %s3908_s16 = scalar_lea.vmem %s2908_s30, 32 }
0x1823   :  { %p3909_p0 = scmp.ne.s32.totalorder %s2908_s30, %s3908_s16  ;;  %p3914_p2 = scmp.lt.s32.totalorder %s3908_s16, %s3908_s16 }
0x1825   :  { %p3915_p3 = por %p3914_p2, %p3913_p1 }
0x1827   :  { %p3916_p4 = pnand %p3915_p3, %p3909_p0 }
0x182c   :  { %v3896_v17 = vpop.eup %3895 }
0x182d   :  { %2172 = vrot.lane.b32.xlu1 %v3896_v17, %s3936_s6 }
0x1831   :  { %2460 = vrot.lane.b32.xlu1 %v2458_v55, %s3939_s15 }
0x189f   :  { %v2173_v59 = vpop.permute.xlu1 %2172 }
0x18a0   :  { %v2175_v9 = vmul.f32 %v3894_v63, %v2173_v59  ;;  %v3678_v63 = vpack.c.bf16 %v2483_v13, %v2482_v61  ;;  %v2977_v13 = vld [vmem:[#allocation2] ss:$0 sm:$0xff] }
0x18a2   :  { %2188 = vrot.lane.b32.xlu0 %v2175_v9, %s3937_s7  ;;  %v2730_v9 = vld [vmem:[%s4729_s18 + $0x20] sm:$0xff] }
0x18a3   :  { %v3690_v14 = vpack.c.bf16 %v2731_v11, %v2730_v9 }
0x1914   :  { %v4535_v2 = vpop.permute.xlu0 %2188 }
0x1915   :  { %3398 = vmatmul.mubr.msk.f32.vlgmr.msra.gmra.mrb[16].mxu0 %vm192_vm6, %v4535_v2 }
0x1916   :  { %3649 = vmatpush3.bf16.msra.mxu0 %v3648_v15  ;;  %3432 = vmatprep.mubr.msk.f32.mxu0 %vm3934_vm4, %v3935_v10  ;;  %v2732_v15 = vld [vmem:[%s4729_s18 + $0x30] sm:$0xff] }
0x1917   :  { %3650 = vmatprep.subr.bf16.mxu0 %v3932_v3  ;;  %v3693_v19 = vpack.c.bf16 %v2733_v18, %v2732_v15 }
0x191a   :  { %3652 = vmatpush3.bf16.msra.mxu0 %v3651_v52 }
0x191b   :  { %3653 = vmatprep.subr.bf16.mxu0 %v3932_v3 }
0x191e   :  { %3655 = vmatpush3.bf16.msra.mxu0 %v3654_v24 }
0x191f   :  { %3656 = vmatprep.subr.bf16.mxu0 %v3932_v3 }
0x1922   :  { %3658 = vmatpush3.bf16.msra.mxu0 %v3657_v28 }
0x1923   :  { %3659 = vmatprep.subr.bf16.mxu0 %v3932_v3 }
0x1926   :  { %3661 = vmatpush3.bf16.msra.mxu0 %v3660_v31 }
0x1927   :  { %3662 = vmatprep.subr.bf16.mxu0 %v3932_v3 }
0x192a   :  { %3664 = vmatpush3.bf16.msra.mxu0 %v3663_v8 }
0x192b   :  { %3665 = vmatprep.subr.bf16.mxu0 %v3932_v3 }
0x192e   :  { %3667 = vmatpush3.bf16.msra.mxu0 %v3666_v29  ;;  %v2461_v29 = vpop.permute.xlu1 %2460 }
0x192f   :  { %3668 = vmatprep.subr.bf16.mxu0 %v3932_v3 }
0x1932   :  { %3670 = vmatpush3.bf16.msra.mxu0 %v3669_v62 }
0x1933   :  { %3446 = vmatprep.subr.mxu0 %v3935_v10 }
0x19e8   :  { %v2258_v41 = vpop.f32.mrb[16].mxu0 }
0x19e9   :  { %v2259_v42 = vadd.f32 %v2963_v39, %v2258_v41  ;;  %v3399_v45 = vpop.f32.mrb[17].mxu0 }
0x19eb   :  { %vm2262_vm15 = vcmp.gt.f32.partialorder %v2259_v42, 0.0  ;;  %v2263_v46 = vmul.f32 0.01, %v2259_v42 }
0x19ed   :  { %v2264_v50 = vsel %vm2262_vm15, %v2259_v42, %v2263_v46  ;;  %v2975_v46 = vld [vmem:[%s4730_s19] ss:$0 sm:$0xff] }
0x19ee   :  { %3433 = vmatmul.mubr.f32.vlgmr.msra.gmra.mrb[18].mxu0 %v2264_v50 }
0x19ef   :  { %3448 = vmatprep.mubr.msk.f32.mxu0 %vm3934_vm4, %v3935_v10  ;;  %3447 = vmatpush3.msk.msra.mxu0 %vm2492_vm0, %v2487_v43 }
0x19f0   :  { %3486 = vmatprep.subr.mxu0 %v3935_v10 }
0x19f2   :  { %3449 = vmatmul.mubr.msk.f32.vlgmr.msra.gmra.mrb[20].mxu0 %vm2488_vm1, %v2486_v54 }
0x19f3   :  { %3488 = vmatprep.mubr.msk.f32.mxu0 %vm3934_vm4, %v3935_v10  ;;  %3487 = vmatpush3.msra.mxu0 %v2817_v20 }
0x1ac1   :  { %v2354_v60 = vpop.f32.mrb[18].mxu0 }
0x1ac2   :  { %v2355_v49 = vadd.f32 %v2965_v56, %v2354_v60  ;;  %v3434_v44 = vpop.f32.mrb[19].mxu0 }
0x1ac4   :  { %vm2358_vm2 = vcmp.gt.f32.partialorder %v2355_v49, 0.0  ;;  %v2359_v48 = vmul.f32 0.01, %v2355_v49 }
0x1ac5   :  { %v2562_v17 = vpop.f32.mrb[20].mxu0 }
0x1ac6   :  { %v2360_v0 = vsel %vm2358_vm2, %v2355_v49, %v2359_v48  ;;  %v3450_v59 = vpop.f32.mrb[21].mxu0 }
0x1ac7   :  { %3444 = vmatmul.mubr.msk.f32.vlgmr.msra.gmra.mrb[18].mxu1 %vm192_vm6, %v2360_v0 }
0x1ac8   :  { %3679 = vmatpush3.bf16.msra.mxu1 %v3678_v63  ;;  %3459 = vmatprep.mubr.msk.f32.mxu1 %vm3934_vm4, %v3935_v10 }
0x1ac9   :  { %3680 = vmatprep.subr.bf16.mxu1 %v3932_v3 }
0x1acc   :  { %3682 = vmatpush3.bf16.msra.mxu1 %v3681_v1 }
0x1acd   :  { %3462 = vmatprep.subr.mxu1 %v3935_v10 }
0x1acf   :  { %3460 = vmatmul.mubr.msk.f32.vlgmr.msra.gmra.mrb[20].mxu1 %vm192_vm6, %v4535_v2  ;;  %v2966_v2 = vld [vmem:[%s4724_s13] ss:$0 sm:$0xff]  ;;  %s3940_s13 = smov 124   ;;  %vm2825_vm6 = vcmask 64512  }
0x1ad0   :  { %3463 = vmatpush3.msk.msra.mxu1 %vm2492_vm0, %v2637_v4  ;;  %3464 = vmatprep.mubr.msk.f32.mxu1 %vm3934_vm4, %v3935_v10 }
0x1ad1   :  { %3683 = vmatprep.subr.bf16.mxu1 %v3932_v3 }
0x1ad3   :  { %3465 = vmatmul.mubr.msk.f32.vlgmr.msra.gmra.mrb[22].mxu1 %vm2488_vm1, %v2636_v47 }
0x1ad4   :  { %3483 = vmatprep.mubr.msk.f32.mxu1 %vm3934_vm4, %v3935_v10  ;;  %3685 = vmatpush3.bf16.msra.mxu1 %v3684_v58  ;;  %v2729_v10 = vld [vmem:[%s4729_s18 + $0x18] sm:$0xff]  ;;  %vm2469_vm4 = vcmask 25600  }
0x1ad5   :  { %3686 = vmatprep.subr.bf16.mxu1 %v3932_v3  ;;  %v3687_v12 = vpack.c.bf16 %v2729_v10, %v2728_v21 }
0x1ad8   :  { %3688 = vmatpush3.bf16.msra.mxu1 %v3687_v12 }
0x1ad9   :  { %3689 = vmatprep.subr.bf16.mxu1 %v3932_v3 }
0x1adc   :  { %3691 = vmatpush3.bf16.msra.mxu1 %v3690_v14 }
0x1add   :  { %3692 = vmatprep.subr.bf16.mxu1 %v3932_v3 }
0x1ae0   :  { %3694 = vmatpush3.bf16.msra.mxu1 %v3693_v19 }
0x1b9a   :  { %v2441_v52 = vpop.f32.mrb[18].mxu1 }
0x1b9b   :  { %v2442_v22 = vadd.f32 %v2966_v2, %v2441_v52  ;;  %v3445_v23 = vpop.f32.mrb[19].mxu1 }
0x1b9d   :  { %v2968_v24 = vmul.f32 -1.442695, %v2442_v22 }
0x1b9f   :  { %3897 = vpow2.f32 %v2968_v24 }
0x1ba2   :  { %v2632_v3 = vpop.f32.mrb[20].mxu1 }
0x1ba3   :  { %v2633_v26 = vadd.f32 %v2632_v3, %v2562_v17  ;;  %v3461_v27 = vpop.f32.mrb[21].mxu1 }
0x1ba6   :  { %v2710_v28 = vpop.f32.mrb[22].mxu1 }
0x1ba7   :  { %v2714_v30 = vadd.f32 %v2710_v28, %v2633_v26  ;;  %v3466_v31 = vpop.f32.mrb[23].mxu1 }
0x1ba9   :  { %v3898_v32 = vpop.eup %3897  ;;  %v2722_v33 = vadd.f32 %v2974_v16, %v2714_v30 }
0x1baa   :  { %v2449_v8 = vadd.f32 1.0, %v3898_v32 }
0x1bab   :  { %vm2723_vm3 = vcmp.gt.f32.partialorder %v2722_v33, 0.0  ;;  %v2724_v25 = vmul.f32 0.01, %v2722_v33 }
0x1bac   :  { %3899 = vrcp.f32 %v2449_v8 }
0x1bad   :  { %v2725_v35 = vsel %vm2723_vm3, %v2722_v33, %v2724_v25  ;;  %3901 = vtanh.f32 %v2442_v22 }
0x1bae   :  { %3484 = vmatmul.mubr.msk.f32.vlgmr.msra.gmra.mrb[24].mxu1 %vm329_vm7, %v2725_v35  ;;  %vm2899_vm7 = vcmask 1024  }
0x1bb6   :  { %v3900_v36 = vpop.eup %3899 }
0x1bb7   :  { %v2463_v34 = vmul.f32 %v3900_v36, %v2461_v29  ;;  %v2452_v62 = vsub.f32 1.0, %v3900_v36  ;;  %v3902_v37 = vpop.eup %3901 }
0x1bb9   :  { %2465 = vrot.lane.b32.xlu1 %v2463_v34, %s3940_s13  ;;  %2454 = vrot.lane.b32.xlu0 %v2452_v62, %s3940_s13 }
0x1c2b   :  { %v2455_v38 = vpop.permute.xlu0 %2454  ;;  %v2466_v41 = vpop.permute.xlu1 %2465 }
0x1c2c   :  { %v2457_v39 = vmul.f32 %v3902_v37, %v2455_v38 }
0x1c2e   :  { %v2468_v42 = vadd.f32 %v2466_v41, %v2457_v39 }
0x1c30   :  { %v2470_v45 = vsel %vm2469_vm4, %v2468_v42, -inf }
0x1c31   :  { %2471 = vmax.xlane.f32.xlu0 %v2470_v45 }
0x1c81   :  { %v2810_v50 = vpop.f32.mrb[24].mxu1 }
0x1c82   :  { %v2811_v51 = vadd.f32 %v2975_v46, %v2810_v50  ;;  %v3485_v40 = vpop.f32.mrb[25].mxu1 }
0x1c84   :  { %vm2814_vm5 = vcmp.gt.f32.partialorder %v2811_v51, 0.0  ;;  %v2815_v7 = vmul.f32 0.01, %v2811_v51 }
0x1c86   :  { %v2816_v43 = vsel %vm2814_vm5, %v2811_v51, %v2815_v7 }
0x1c87   :  { %3489 = vmatmul.mubr.msk.f32.vlgmr.msra.gmra.mrb[22].mxu0 %vm2825_vm6, %v2816_v43 }
0x1cbe   :  { %v2472_v54 = vpop.xlane.xlu0 %2471 }
0x1cbf   :  { %v2473_v55 = vsub.f32 %v2468_v42, %v2472_v54 }
0x1cc1   :  { %v2474_v56 = vmul.f32 1.442695, %v2473_v55 }
0x1cc3   :  { %3903 = vpow2.f32 %v2474_v56 }
0x1ccd   :  { %v3904_v60 = vpop.eup %3903 }
0x1cce   :  { %v2476_v61 = vsel %vm2469_vm4, %v3904_v60, 0.0 }
0x1ccf   :  { %2477 = vadd.xlane.f32.xlu1 %v2476_v61 }
0x1d5a   :  { %v2895_v49 = vpop.f32.mrb[22].mxu0 }
0x1d5b   :  { %v2896_v44 = vadd.f32 %v2977_v13, %v2895_v49  ;;  %v3490_v48 = vpop.f32.mrb[23].mxu0 }
0x1d5c   :  { %v2478_v63 = vpop.xlane.xlu1 %2477 }
0x1d5d   :  { %2900 = vst.msk [vmem:[%s4734_s23] sm:$0x3] %vm2899_vm7, %v2896_v44  ;;  %3905 = vrcp.f32 %v2478_v63 }
0x1d67   :  { %v3906_v53 = vpop.eup %3905 }
0x1d68   :  { %v2480_v57 = vmul.f32 %v3906_v53, %v3904_v60 }
0x1d6a   :  { %2481 = vst.msk [vmem:[#allocation3] sm:$0x3] %vm2469_vm4, %v2480_v57 }
0x1d6b   :  { %3919 = shalt.err (!%p3916_p4)
}
0x1d6c   :  { %s3920_s6 = scalar_lea.hbm %s4733_s22, 32 }
0x1d6d   :  { %p3921_p5 = scmp.ne.s32.totalorder %s4733_s22, %s3920_s6  ;;  %p3924_p6 = scmp.lt.u32.totalorder %s3920_s6, %s4733_s22 }
0x1d6f   :  { %p3926_p7 = pnand %p3924_p6, %p3921_p5 }
0x1d71   :  { %3929 = shalt.err (!%p3926_p7)
}
0x1d72   :  { %2910 = dma.vmem_to_hbm [thread:$0]  %s2908_s30, 32, %s4733_s22, [#allocation4]  }
0x1d73   :  { %3930 = dma.done.wait [#allocation4], 32  }
0x1d74   :  { %3931 = vsyncadd [#allocation4], 4294967264 }
0x1d75   :  { %2918 = vsyncpa [#allocation4], 1 }

</bundles_post_ra>
